<compile_context>
chip_gen: v6e
topology: v6e:2x2x1
jax: 0.10.0
libtpu: 0.0.40
codegen_flags: <defaults>
</compile_context>

<pallas_src>
import functools

import jax
import jax.numpy as jnp
from jax.experimental import pallas as pl
from jax.experimental.pallas import tpu as pltpu

EPS = 1e-5                      # PyTorch BatchNorm2d default eps
LANE = 128                      # lane width / channel padding target
VMEM_LIMIT = 32 * 1024 * 1024   # explicit scoped-VMEM cap (v7x-safe)
TILE_M = 1024                   # flat conv-output rows per grid step (mult of 8)


# ----------------------------------------------------------------------------- helpers
def _round_up(x, m):
    return (x + m - 1) // m * m


def _pad_last(x, target):
    c = x.shape[-1]
    if c == target:
        return x
    return jnp.pad(x, [(0, 0)] * (x.ndim - 1) + [(0, target - c)])


def _parity_layout(x4, *, pad, stride, pad_value=0.0):
    """NHWC -> spatially padded, stride-parity-decomposed layout.

    Returns xq of shape [s*s, N, Hq, Wq8, C] plus geometry (hp0, wp0, hq, wq8).
    For stride 1 this is a single jnp.pad (no transpose copy)."""
    n, h, w, c = x4.shape
    s = stride
    hp0, wp0 = h + 2 * pad, w + 2 * pad
    hp, wp = _round_up(hp0, s), _round_up(wp0, s)
    hq, wq = hp // s, wp // s
    wq8 = _round_up(wq, 8)
    if s == 1:
        xq = jnp.pad(x4, ((0, 0), (pad, hp - h - pad), (pad, wq8 - w - pad), (0, 0)),
                     constant_values=pad_value)[None]
        return xq, (hp0, wp0, hq, wq8)
    xp = jnp.pad(x4, ((0, 0), (pad, hp - h - pad), (pad, wp - w - pad), (0, 0)),
                 constant_values=pad_value)
    xq = xp.reshape(n, hq, s, wq, s, c).transpose(2, 4, 0, 1, 3, 5)
    xq = xq.reshape(s * s, n, hq, wq, c)
    if wq8 != wq:
        xq = jnp.pad(xq, ((0, 0), (0, 0), (0, 0), (0, wq8 - wq), (0, 0)),
                     constant_values=pad_value)
    return xq, (hp0, wp0, hq, wq8)


def _im2col(x, kh, kw, stride, pad):
    """7x7 stem: dense patches so the stem becomes one K = kh*kw*cin matmul."""
    n, h, w, c = x.shape
    ho = (h + 2 * pad - kh) // stride + 1
    wo = (w + 2 * pad - kw) // stride + 1
    xp = jnp.pad(x, ((0, 0), (pad, pad), (pad, pad), (0, 0)))
    cols = []
    for di in range(kh):
        for dj in range(kw):
            cols.append(xp[:, di:di + (ho - 1) * stride + 1:stride,
                           dj:dj + (wo - 1) * stride + 1:stride, :])
    patches = jnp.concatenate(cols, axis=-1)        # (n, ho, wo, kh*kw*c)
    return patches, ho, wo


# ----------------------------------------------------------------------------- kernels
def _conv_tap_kernel(x_hbm, w_ref, mask_ref, o_ref, stats_ref, xbuf, sem, *,
                     taps, tile, slab, n_planes):
    """Pass 1: tap-reduction conv (MXU) + masked BN sum / sum-sq accumulation.

    x_hbm   : [n_planes, M_in, Cp_in] bf16 in HBM.  One `slab`-row slab per
              parity plane is DMA'd per grid step (double-buffered across
              steps); every tap is a static row-offset slice of it.
    w_ref   : [taps, Cp_in, Coutp] bf16, resident across the grid.
    mask_ref: [tile, 1] f32 validity (1 for rows mapping to real output pixels).
    o_ref   : [tile, Coutp] bf16, written once (no per-tap accumulator RMW).
    stats_ref: [8, Coutp] f32 per grid group; rows 0/1 = sum / sum-of-squares.
    """
    c = pl.program_id(0)
    i = pl.program_id(1)
    ni = pl.num_programs(1)

    def copy(step, slot, p):
        base = pl.multiple_of((c * ni + step) * tile, 8)
        return pltpu.make_async_copy(
            x_hbm.at[p, pl.ds(base, slab), :],
            xbuf.at[slot, p],
            sem.at[slot, p])

    slot = i % 2

    @pl.when(i == 0)
    def _():
        for p in range(n_planes):
            copy(i, 0, p).start()                       # prime this step
        stats_ref[...] = jnp.zeros_like(stats_ref)

    @pl.when(i + 1 < ni)
    def _():
        for p in range(n_planes):
            copy(i + 1, 1 - slot, p).start()            # prefetch next step

    for p in range(n_planes):
        copy(i, slot, p).wait()                         # exact descriptors

    acc = None
    for t, (p, off) in enumerate(taps):                 # static unroll
        xt = xbuf[slot, p, off:off + tile, :]
        d = jnp.dot(xt, w_ref[t], preferred_element_type=jnp.float32)
        acc = d if acc is None else acc + d

    m = mask_ref[...]                                   # (tile, 1) f32
    am = acc * m
    stats_ref[0:1, :] += jnp.sum(am, axis=0, keepdims=True)
    stats_ref[1:2, :] += jnp.sum(am * acc, axis=0, keepdims=True)

    o_ref[...] = acc.astype(o_ref.dtype)


def _bn_apply_kernel(x_ref, stats_ref, g_ref, b_ref, *rest, hq, wq8, ho, wo,
                     count, groups, relu, has_res):
    """Pass 2 (one grid step per image): BN finalize + optional residual +
    ReLU + compaction of the padded (hq, wq8) rows to dense (ho, wo)."""
    if has_res:
        res_ref, o_ref = rest
    else:
        (o_ref,) = rest
    coutp = o_ref.shape[-1]

    ssum = stats_ref[0:1, :]
    ssq = stats_ref[1:2, :]
    if groups == 2:
        ssum = ssum + stats_ref[8:9, :]
        ssq = ssq + stats_ref[9:10, :]
    inv_n = 1.0 / count
    mean = ssum * inv_n
    # TODO(synk): E[x^2] - E[x]^2 in f32 can cancel when |mean| >> std.
    var = ssq * inv_n - mean * mean
    inv = jax.lax.rsqrt(jnp.maximum(var, 0.0) + EPS)
    scale = (inv * g_ref[...]).reshape(1, 1, coutp)
    shift = (b_ref[...] - mean * inv * g_ref[...]).reshape(1, 1, coutp)

    x = x_ref[...].astype(jnp.float32).reshape(hq, wq8, coutp)[:ho, :wo, :]
    y = x * scale + shift
    if has_res:
        y = y + res_ref[...].astype(jnp.float32)
    if relu:
        y = jnp.maximum(y, 0.0)
    o_ref[...] = y.astype(o_ref.dtype)


def _maxpool_kernel(x_ref, o_ref, *, taps, ho, wo):
    """Max over the kh*kw taps, looped inside the kernel (one step per image)."""
    acc = None
    for (p, qi, qj) in taps:                            # static unroll
        win = x_ref[p, 0, qi:qi + ho, qj:qj + wo, :]
        acc = win if acc is None else jnp.maximum(acc, win)
    o_ref[...] = acc


def _head_kernel(x_ref, w_ref, b_ref, o_ref, *, hw):
    """AdaptiveAvgPool2d(1) + Linear, lane-dense (classes padded to 128)."""
    x = x_ref[...].astype(jnp.float32)                  # (N, HW, Cp)
    pooled = jnp.sum(x, axis=1) * (1.0 / hw)            # (N, Cp)
    y = jnp.dot(pooled.astype(jnp.bfloat16), w_ref[...],
                preferred_element_type=jnp.float32)
    o_ref[...] = y + b_ref[...]


# ----------------------------------------------------------------------------- wrappers
def conv_bn(act, shape_nhwc, w, gamma, beta, *, stride, pad, relu,
            residual=None, tile_m=TILE_M):
    """Fused Conv2d(bias=False) + BatchNorm2d(train stats) [+res] [+ReLU].

    act : dense lane-dense activation [N*H, W, Cp_in] bf16
    Returns (out_act [N*Ho, Wo, Coutp] bf16, logical (N, Ho, Wo, Cout))."""
    n, h, wdt, cin = shape_nhwc
    kh, kw, wcin, cout = w.shape
    cp_in = act.shape[-1]
    coutp = _round_up(cout, LANE)
    s = stride

    x4 = act.reshape(n, h, wdt, cp_in)

    if kh == 1 and kw == 1:
        # 1x1 conv only reads parity plane (0,0): direct subsample, no halo.
        assert pad == 0
        xs = x4[:, ::s, ::s, :]
        hq, wq = xs.shape[1], xs.shape[2]
        wq8 = _round_up(wq, 8)
        if wq8 != wq:
            xs = jnp.pad(xs, ((0, 0), (0, 0), (0, wq8 - wq), (0, 0)))
        ho, wo = hq, wq
        xflat = xs.reshape(1, n * hq * wq8, cp_in)
        tap_list = [(0, 0)]
        n_planes = 1
    else:
        xq, (hp0, wp0, hq, wq8) = _parity_layout(x4, pad=pad, stride=s)
        ho = (hp0 - kh) // s + 1
        wo = (wp0 - kw) // s + 1
        tap_list = [((di % s) * s + (dj % s), (di // s) * wq8 + dj // s)
                    for di in range(kh) for dj in range(kw)]
        n_planes = s * s
        xflat = xq.reshape(n_planes, n * hq * wq8, cp_in)

    n_taps = len(tap_list)
    off_max = max(o for _, o in tap_list)

    nhw = n * hq * wq8
    tile = min(tile_m, nhw)
    m_tiles = pl.cdiv(nhw, tile)
    groups = 2 if m_tiles >= 2 else 1       # outer 'parallel' axis (v7x 2nd TC)
    ni = pl.cdiv(m_tiles, groups)
    nhw_pad = groups * ni * tile
    slab = _round_up(tile + off_max, 8)
    m_in = nhw_pad + slab - tile

    xflat = jnp.pad(xflat, ((0, 0), (0, m_in - nhw), (0, 0)))

    wp = jnp.pad(w, ((0, 0), (0, 0), (0, cp_in - wcin), (0, coutp - cout)))
    wp = wp.reshape(n_taps, cp_in, coutp).astype(jnp.bfloat16)

    # Precomputed validity mask (no in-kernel mod/div in the stats epilogue).
    rows = jnp.arange(nhw_pad, dtype=jnp.int32)
    valid = (rows % wq8 < wo) & ((rows // wq8) % hq < ho) & (rows < nhw)
    mask = valid.astype(jnp.float32).reshape(nhw_pad, 1)

    conv_flat, stats = pl.pallas_call(
        functools.partial(_conv_tap_kernel, taps=tuple(tap_list), tile=tile,
                          slab=slab, n_planes=n_planes),
        grid=(groups, ni),
        in_specs=[
            pl.BlockSpec(memory_space=pl.ANY),                     # manual DMA
            pl.BlockSpec((n_taps, cp_in, coutp), lambda c, i: (0, 0, 0)),
            pl.BlockSpec((tile, 1), lambda c, i: (c * ni + i, 0)),
        ],
        out_specs=[
            pl.BlockSpec((tile, coutp), lambda c, i: (c * ni + i, 0)),
            pl.BlockSpec((8, coutp), lambda c, i: (c, 0)),         # per-group stats
        ],
        out_shape=(jax.ShapeDtypeStruct((nhw_pad, coutp), jnp.bfloat16),
                   jax.ShapeDtypeStruct((groups * 8, coutp), jnp.float32)),
        scratch_shapes=[pltpu.VMEM((2, n_planes, slab, cp_in), jnp.bfloat16),
                        pltpu.SemaphoreType.DMA((2, n_planes))],
        compiler_params=pltpu.CompilerParams(
            dimension_semantics=("parallel", "arbitrary"),
            vmem_limit_bytes=VMEM_LIMIT),
    )(xflat, wp, mask)

    # Pass 2: BN apply (+residual +ReLU) and compaction, one grid step / image.
    g2 = _pad_last(gamma.reshape(1, cout).astype(jnp.float32), coutp)
    b2 = _pad_last(beta.reshape(1, cout).astype(jnp.float32), coutp)
    count = float(n * ho * wo)

    inputs = [conv_flat, stats, g2, b2]
    in_specs = [
        pl.BlockSpec((hq * wq8, coutp), lambda r: (r, 0)),
        pl.BlockSpec((groups * 8, coutp), lambda r: (0, 0)),
        pl.BlockSpec((1, coutp), lambda r: (0, 0)),
        pl.BlockSpec((1, coutp), lambda r: (0, 0)),
    ]
    if residual is not None:
        inputs.append(residual)
        in_specs.append(pl.BlockSpec((ho, wo, coutp), lambda r: (r, 0, 0)))

    out_act = pl.pallas_call(
        functools.partial(_bn_apply_kernel, hq=hq, wq8=wq8, ho=ho, wo=wo,
                          count=count, groups=groups, relu=relu,
                          has_res=residual is not None),
        grid=(n,),
        in_specs=in_specs,
        out_specs=pl.BlockSpec((ho, wo, coutp), lambda r: (r, 0, 0)),
        out_shape=jax.ShapeDtypeStruct((n * ho, wo, coutp), jnp.bfloat16),
        compiler_params=pltpu.CompilerParams(
            dimension_semantics=("parallel",),
            vmem_limit_bytes=VMEM_LIMIT),
    )(*inputs)

    return out_act, (n, ho, wo, cout)


def max_pool(act, shape_nhwc, *, kernel=3, stride=2, pad=1):
    n, h, wdt, c = shape_nhwc
    cp = act.shape[-1]
    s = stride
    x4 = act.reshape(n, h, wdt, cp)
    xq, (hp0, wp0, hq, wq8) = _parity_layout(x4, pad=pad, stride=s,
                                             pad_value=float("-inf"))
    ho = (hp0 - kernel) // s + 1
    wo = (wp0 - kernel) // s + 1
    taps = tuple(((di % s) * s + (dj % s), di // s, dj // s)
                 for di in range(kernel) for dj in range(kernel))

    out_act = pl.pallas_call(
        functools.partial(_maxpool_kernel, taps=taps, ho=ho, wo=wo),
        grid=(n,),
        in_specs=[pl.BlockSpec((s * s, 1, hq, wq8, cp),
                               lambda r: (0, r, 0, 0, 0))],
        out_specs=pl.BlockSpec((ho, wo, cp), lambda r: (r, 0, 0)),
        out_shape=jax.ShapeDtypeStruct((n * ho, wo, cp), act.dtype),
        compiler_params=pltpu.CompilerParams(
            dimension_semantics=("parallel",),
            vmem_limit_bytes=VMEM_LIMIT),
    )(xq)
    return out_act, (n, ho, wo, c)


def avgpool_classifier(act, shape_nhwc, fc_w, fc_b):
    n, h, wdt, c = shape_nhwc
    cp = act.shape[-1]
    hw = h * wdt
    n_class = fc_w.shape[1]
    ncp = _round_up(n_class, LANE)

    x3 = act.reshape(n, hw, cp)
    wp = _pad_last(jnp.pad(fc_w, ((0, cp - c), (0, 0))), ncp).astype(jnp.bfloat16)
    bp = _pad_last(fc_b.reshape(1, n_class), ncp).astype(jnp.float32)

    out = pl.pallas_call(
        functools.partial(_head_kernel, hw=hw),
        out_shape=jax.ShapeDtypeStruct((n, ncp), jnp.float32),
        in_specs=[pl.BlockSpec(memory_space=pltpu.MemorySpace.VMEM)] * 3,
        out_specs=pl.BlockSpec(memory_space=pltpu.MemorySpace.VMEM),
        compiler_params=pltpu.CompilerParams(vmem_limit_bytes=VMEM_LIMIT),
    )(x3, wp, bp)
    return out[:, :n_class]


# ----------------------------------------------------------------------------- model
def build_resnet_params(key, *, in_channel=3, n_class=10, architecture=18,
                        first_conv_out_channel=8):
    blocks_per_stage = {18: [2, 2, 2, 2], 34: [2, 4, 6, 3],
                        50: [3, 4, 6, 3], 101: [3, 4, 23, 3]}[architecture]
    small_net = architecture in (18, 34)
    n_conv = 2 if small_net else 3

    keys = iter(jax.random.split(key, 4096))

    def conv_w(kh, kw, cin, cout):
        return 0.1 * jax.random.normal(next(keys), (kh, kw, cin, cout), jnp.float32)

    def bn(c):  # gamma=1, beta=0 (PyTorch BatchNorm2d default init)
        return jnp.ones((c,), jnp.float32), jnp.zeros((c,), jnp.float32)

    params = {}
    g, b = bn(first_conv_out_channel)
    params["conv1"] = dict(w=conv_w(7, 7, in_channel, first_conv_out_channel),
                           gamma=g, beta=b, stride=2, pad=3)

    stages = []
    in_c = first_conv_out_channel
    out_c = first_conv_out_channel
    for i, r_n in enumerate(blocks_per_stage):
        stage = []
        for j in range(r_n):
            stride = 1 if i == 0 or j > 0 else 2
            convs = []
            if n_conv == 2:
                g1, b1 = bn(out_c)
                convs.append(dict(w=conv_w(3, 3, in_c, out_c), gamma=g1, beta=b1,
                                  stride=stride, pad=1))
                g2, b2 = bn(out_c)
                convs.append(dict(w=conv_w(3, 3, out_c, out_c), gamma=g2, beta=b2,
                                  stride=1, pad=1))
                final_c = out_c
            else:  # bottleneck (architecture 50 / 101)
                g1, b1 = bn(out_c)
                convs.append(dict(w=conv_w(1, 1, in_c, out_c), gamma=g1, beta=b1,
                                  stride=stride, pad=0))
                g2, b2 = bn(out_c)
                convs.append(dict(w=conv_w(3, 3, out_c, out_c), gamma=g2, beta=b2,
                                  stride=1, pad=1))
                g3, b3 = bn(out_c * 4)
                convs.append(dict(w=conv_w(1, 1, out_c, out_c * 4), gamma=g3, beta=b3,
                                  stride=1, pad=0))
                final_c = out_c * 4
            proj = None
            if stride == 2 or (n_conv == 3 and j == 0):
                gp, bp = bn(final_c)
                proj = dict(w=conv_w(1, 1, in_c, final_c), gamma=gp, beta=bp,
                            stride=stride, pad=0)
            stage.append(dict(convs=convs, proj=proj))
            in_c = final_c
        stages.append(stage)
        out_c = out_c * 2

    params["stages"] = stages
    params["fc_w"] = 0.1 * jax.random.normal(next(keys), (in_c, n_class), jnp.float32)
    params["fc_b"] = jnp.zeros((n_class,), jnp.float32)
    return params


def resnet_forward(params, x_nchw):
    # PyTorch convention is NCHW at the boundary; kernels use lane-dense NHWC.
    x = jnp.transpose(x_nchw, (0, 2, 3, 1)).astype(jnp.float32)
    n = x.shape[0]

    # 7x7/2 stem: im2col to K = kh*kw*cin (147 -> 256 padded) and run it as a
    # single-tap conv so the MXU multiplies real data instead of 49 taps of
    # mostly-zero channel padding.
    c1 = params["conv1"]
    kh, kw, cin, cout1 = c1["w"].shape
    patches, ho, wo = _im2col(x, kh, kw, c1["stride"], c1["pad"])
    kdim = kh * kw * cin
    kp = _round_up(kdim, LANE)
    act = _pad_last(patches, kp).astype(jnp.bfloat16).reshape(n * ho, wo, kp)
    w1 = c1["w"].reshape(1, 1, kdim, cout1)
    act, shape = conv_bn(act, (n, ho, wo, kdim), w1, c1["gamma"], c1["beta"],
                         stride=1, pad=0, relu=True)
    act, shape = max_pool(act, shape, kernel=3, stride=2, pad=1)

    for stage in params["stages"]:
        for block in stage:
            res_act, res_shape = act, shape
            convs = block["convs"]
            n_conv = len(convs)
            for idx, cv in enumerate(convs, start=1):
                if idx == n_conv:
                    if block["proj"] is not None:
                        p = block["proj"]
                        res_act, res_shape = conv_bn(
                            res_act, res_shape, p["w"], p["gamma"], p["beta"],
                            stride=p["stride"], pad=p["pad"], relu=False)
                    act, shape = conv_bn(act, shape, cv["w"], cv["gamma"],
                                         cv["beta"], stride=cv["stride"],
                                         pad=cv["pad"], relu=True,
                                         residual=res_act)
                else:
                    act, shape = conv_bn(act, shape, cv["w"], cv["gamma"],
                                         cv["beta"], stride=cv["stride"],
                                         pad=cv["pad"], relu=True)

    return avgpool_classifier(act, shape, params["fc_w"], params["fc_b"])


if __name__ == "__main__":
    key = jax.random.PRNGKey(0)
    pkey, xkey = jax.random.split(key)

    # Small-shape instantiation of the module: architecture=18, 8 base channels,
    # 10 classes, input NCHW [2, 3, 32, 32].
    params = build_resnet_params(pkey, in_channel=3, n_class=10,
                                 architecture=18, first_conv_out_channel=8)
    x = jax.random.normal(xkey, (2, 3, 32, 32), jnp.float32)

    out = resnet_forward(params, x)
    out = jax.block_until_ready(out)
    assert out.shape == (2, 10), out.shape
    assert jnp.all(jnp.isfinite(out))
    print("KERNEL_OK")
</pallas_src>

<mosaic_0001>
module attributes {stable_mosaic.version = 11 : i64} {
  func.func @_conv_tap_kernel(%arg0: i32, %arg1: i32, %arg2: memref<1x512x256xbf16, #tpu.memory_space<any>>, %arg3: memref<1x256x128xbf16, #tpu.memory_space<vmem>>, %arg4: memref<512x1xf32, #tpu.memory_space<vmem>>, %arg5: memref<512x128xbf16, #tpu.memory_space<vmem>>, %arg6: memref<8x128xf32, #tpu.memory_space<vmem>>, %arg7: memref<2x1x512x256xbf16, #tpu.memory_space<vmem>>, %arg8: memref<2x1x!tpu.dma_semaphore, #tpu.memory_space<semaphore_mem>>) attributes {dimension_semantics = [#tpu.dimension_semantics<parallel>, #tpu.dimension_semantics<arbitrary>], iteration_bounds = array<i64: 1, 1>, scalar_prefetch = 0 : i64, scratch_operands = 2 : i64, tpu.core_type = #tpu.core_type<tc>, window_params = [{}, {pipeline_mode = #tpu.pipeline_mode<synchronous>, transform_indices = @transform_1, window_bounds = array<i64: 1, 256, 128>}, {transform_indices = @transform_2, window_bounds = array<i64: 512, 1>}, {transform_indices = @transform_3, window_bounds = array<i64: 512, 128>}, {transform_indices = @transform_4, window_bounds = array<i64: 8, 128>}]} {
    %c2_i32 = arith.constant 2 : i32
    %c0_i32 = arith.constant 0 : i32
    %0 = arith.cmpi eq, %c2_i32, %c0_i32 : i32
    %c1_i32 = arith.constant 1 : i32
    %1 = arith.select %0, %c1_i32, %c2_i32 : i32
    %2 = arith.remsi %arg1, %1 : i32
    %c0_i32_0 = arith.constant 0 : i32
    %3 = arith.cmpi ne, %2, %c0_i32_0 : i32
    %c0_i32_1 = arith.constant 0 : i32
    %4 = arith.cmpi slt, %2, %c0_i32_1 : i32
    %c0_i32_2 = arith.constant 0 : i32
    %5 = arith.cmpi slt, %1, %c0_i32_2 : i32
    %6 = arith.xori %4, %5 : i1
    %7 = arith.andi %6, %3 : i1
    %8 = arith.addi %2, %1 : i32
    %9 = arith.select %7, %8, %2 : i32
    %c0_i32_3 = arith.constant 0 : i32
    %10 = arith.cmpi eq, %arg1, %c0_i32_3 : i32
    %11 = arith.extui %10 : i1 to i32
    %c0_i32_4 = arith.constant 0 : i32
    %12 = arith.cmpi ne, %11, %c0_i32_4 : i32
    scf.if %12 {
      %c1_i32_33 = arith.constant 1 : i32
      %49 = arith.muli %arg0, %c1_i32_33 : i32
      %50 = arith.addi %49, %arg1 : i32
      %c512_i32_34 = arith.constant 512 : i32
      %51 = arith.muli %50, %c512_i32_34 : i32
      %52 = tpu.assume_multiple %51, 8 : i32
      %c0_i32_35 = arith.constant 0 : i32
      %c0_i32_36 = arith.constant 0 : i32
      %c0_i32_37 = arith.constant 0 : i32
      %c0_i32_38 = arith.constant 0 : i32
      %c0_i32_39 = arith.constant 0 : i32
      %c0_i32_40 = arith.constant 0 : i32
      %53 = tpu.memref_slice %arg2[%c0_i32_35, %52, %c0_i32_40] : memref<1x512x256xbf16, #tpu.memory_space<any>> -> memref<1x512x256xbf16, #tpu.memory_space<any>>
      %54 = tpu.memref_squeeze %53 : memref<1x512x256xbf16, #tpu.memory_space<any>> -> memref<512x256xbf16, #tpu.memory_space<any>>
      %c0_i32_41 = arith.constant 0 : i32
      %c0_i32_42 = arith.constant 0 : i32
      %55 = tpu.memref_slice %arg7[%c0_i32_36, %c0_i32_37, %c0_i32_41, %c0_i32_42] : memref<2x1x512x256xbf16, #tpu.memory_space<vmem>> -> memref<1x1x512x256xbf16, #tpu.memory_space<vmem>>
      %56 = tpu.memref_squeeze %55 : memref<1x1x512x256xbf16, #tpu.memory_space<vmem>> -> memref<512x256xbf16, #tpu.memory_space<vmem>>
      %57 = tpu.memref_slice %arg8[%c0_i32_38, %c0_i32_39] : memref<2x1x!tpu.dma_semaphore, #tpu.memory_space<semaphore_mem>> -> memref<1x1x!tpu.dma_semaphore, #tpu.memory_space<semaphore_mem>>
      %58 = tpu.memref_squeeze %57 : memref<1x1x!tpu.dma_semaphore, #tpu.memory_space<semaphore_mem>> -> memref<!tpu.dma_semaphore, #tpu.memory_space<semaphore_mem>>
      tpu.enqueue_dma source(%54 : memref<512x256xbf16, #tpu.memory_space<any>>) target(%56 : memref<512x256xbf16, #tpu.memory_space<vmem>>) target_semaphore(%58 : memref<!tpu.dma_semaphore, #tpu.memory_space<semaphore_mem>>)
      %cst_43 = arith.constant 0.000000e+00 : f32
      %59 = vector.broadcast %cst_43 : f32 to vector<8x128xf32>
      %c0_44 = arith.constant 0 : index
      %c0_45 = arith.constant 0 : index
      %60 = vector.load %arg6[%c0_44, %c0_45] : memref<8x128xf32, #tpu.memory_space<vmem>>, vector<8x128xf32>
      tpu.vector_store %arg6[%c0_44, %c0_45], %59 {strides = array<i32>} : memref<8x128xf32, #tpu.memory_space<vmem>>, vector<8x128xf32>,
    } else {
    }
    %c1_i32_5 = arith.constant 1 : i32
    %13 = arith.addi %arg1, %c1_i32_5 : i32
    %c1_i32_6 = arith.constant 1 : i32
    %14 = arith.cmpi slt, %13, %c1_i32_6 : i32
    %15 = arith.extui %14 : i1 to i32
    %c0_i32_7 = arith.constant 0 : i32
    %16 = arith.cmpi ne, %15, %c0_i32_7 : i32
    scf.if %16 {
      %c1_i32_33 = arith.constant 1 : i32
      %49 = arith.addi %arg1, %c1_i32_33 : i32
      %c1_i32_34 = arith.constant 1 : i32
      %50 = arith.subi %c1_i32_34, %9 : i32
      %c1_i32_35 = arith.constant 1 : i32
      %51 = arith.muli %arg0, %c1_i32_35 : i32
      %52 = arith.addi %51, %49 : i32
      %c512_i32_36 = arith.constant 512 : i32
      %53 = arith.muli %52, %c512_i32_36 : i32
      %54 = tpu.assume_multiple %53, 8 : i32
      %c0_i32_37 = arith.constant 0 : i32
      %c0_i32_38 = arith.constant 0 : i32
      %c0_i32_39 = arith.constant 0 : i32
      %c0_i32_40 = arith.constant 0 : i32
      %55 = tpu.memref_slice %arg2[%c0_i32_37, %54, %c0_i32_40] : memref<1x512x256xbf16, #tpu.memory_space<any>> -> memref<1x512x256xbf16, #tpu.memory_space<any>>
      %56 = tpu.memref_squeeze %55 : memref<1x512x256xbf16, #tpu.memory_space<any>> -> memref<512x256xbf16, #tpu.memory_space<any>>
      %c0_i32_41 = arith.constant 0 : i32
      %c0_i32_42 = arith.constant 0 : i32
      %57 = tpu.memref_slice %arg7[%50, %c0_i32_38, %c0_i32_41, %c0_i32_42] : memref<2x1x512x256xbf16, #tpu.memory_space<vmem>> -> memref<1x1x512x256xbf16, #tpu.memory_space<vmem>>
      %58 = tpu.memref_squeeze %57 : memref<1x1x512x256xbf16, #tpu.memory_space<vmem>> -> memref<512x256xbf16, #tpu.memory_space<vmem>>
      %59 = tpu.memref_slice %arg8[%50, %c0_i32_39] : memref<2x1x!tpu.dma_semaphore, #tpu.memory_space<semaphore_mem>> -> memref<1x1x!tpu.dma_semaphore, #tpu.memory_space<semaphore_mem>>
      %60 = tpu.memref_squeeze %59 : memref<1x1x!tpu.dma_semaphore, #tpu.memory_space<semaphore_mem>> -> memref<!tpu.dma_semaphore, #tpu.memory_space<semaphore_mem>>
      tpu.enqueue_dma source(%56 : memref<512x256xbf16, #tpu.memory_space<any>>) target(%58 : memref<512x256xbf16, #tpu.memory_space<vmem>>) target_semaphore(%60 : memref<!tpu.dma_semaphore, #tpu.memory_space<semaphore_mem>>)
    } else {
    }
    %c1_i32_8 = arith.constant 1 : i32
    %17 = arith.muli %arg0, %c1_i32_8 : i32
    %18 = arith.addi %17, %arg1 : i32
    %c512_i32 = arith.constant 512 : i32
    %19 = arith.muli %18, %c512_i32 : i32
    %20 = tpu.assume_multiple %19, 8 : i32
    %c0_i32_9 = arith.constant 0 : i32
    %c0_i32_10 = arith.constant 0 : i32
    %c0_i32_11 = arith.constant 0 : i32
    %c0_i32_12 = arith.constant 0 : i32
    %21 = tpu.memref_slice %arg2[%c0_i32_9, %20, %c0_i32_12] : memref<1x512x256xbf16, #tpu.memory_space<any>> -> memref<1x512x256xbf16, #tpu.memory_space<any>>
    %22 = tpu.memref_squeeze %21 : memref<1x512x256xbf16, #tpu.memory_space<any>> -> memref<512x256xbf16, #tpu.memory_space<any>>
    %c0_i32_13 = arith.constant 0 : i32
    %c0_i32_14 = arith.constant 0 : i32
    %23 = tpu.memref_slice %arg7[%9, %c0_i32_10, %c0_i32_13, %c0_i32_14] : memref<2x1x512x256xbf16, #tpu.memory_space<vmem>> -> memref<1x1x512x256xbf16, #tpu.memory_space<vmem>>
    %24 = tpu.memref_squeeze %23 : memref<1x1x512x256xbf16, #tpu.memory_space<vmem>> -> memref<512x256xbf16, #tpu.memory_space<vmem>>
    %25 = tpu.memref_slice %arg8[%9, %c0_i32_11] : memref<2x1x!tpu.dma_semaphore, #tpu.memory_space<semaphore_mem>> -> memref<1x1x!tpu.dma_semaphore, #tpu.memory_space<semaphore_mem>>
    %26 = tpu.memref_squeeze %25 : memref<1x1x!tpu.dma_semaphore, #tpu.memory_space<semaphore_mem>> -> memref<!tpu.dma_semaphore, #tpu.memory_space<semaphore_mem>>
    tpu.wait_dma2 semaphore(%26 : memref<!tpu.dma_semaphore, #tpu.memory_space<semaphore_mem>>) src(%22 : memref<512x256xbf16, #tpu.memory_space<any>>) dst(%24 : memref<512x256xbf16, #tpu.memory_space<vmem>>)
    %27 = arith.index_cast %9 : i32 to index
    %c0 = arith.constant 0 : index
    %c0_15 = arith.constant 0 : index
    %c0_16 = arith.constant 0 : index
    %28 = vector.load %arg7[%27, %c0, %c0_15, %c0_16] : memref<2x1x512x256xbf16, #tpu.memory_space<vmem>>, vector<1x1x512x256xbf16>
    %29 = vector.shape_cast %28 : vector<1x1x512x256xbf16> to vector<512x256xbf16>
    %c0_17 = arith.constant 0 : index
    %c0_18 = arith.constant 0 : index
    %c0_19 = arith.constant 0 : index
    %30 = vector.load %arg3[%c0_17, %c0_18, %c0_19] : memref<1x256x128xbf16, #tpu.memory_space<vmem>>, vector<1x256x128xbf16>
    %31 = vector.shape_cast %30 : vector<1x256x128xbf16> to vector<256x128xbf16>
    %cst = arith.constant dense<0.000000e+00> : vector<512x128xf32>
    %32 = tpu.matmul %29, %31, %cst {dimension_numbers = #tpu.dot_dimension_numbers<[1], [0], [0], [1], [0, 0, 1, 1], [], []>} : vector<512x256xbf16>, vector<256x128xbf16>, vector<512x128xf32> -> vector<512x128xf32>
    %c0_20 = arith.constant 0 : index
    %c0_21 = arith.constant 0 : index
    %33 = vector.load %arg4[%c0_20, %c0_21] : memref<512x1xf32, #tpu.memory_space<vmem>>, vector<512x1xf32>
    %34 = vector.broadcast %33 : vector<512x1xf32> to vector<512x128xf32>
    %35 = arith.mulf %32, %34 : vector<512x128xf32>
    %c0_22 = arith.constant 0 : index
    %c0_23 = arith.constant 0 : index
    %36 = vector.load %arg6[%c0_22, %c0_23] : memref<8x128xf32, #tpu.memory_space<vmem>>, vector<1x128xf32>
    %cst_24 = arith.constant dense<0.000000e+00> : vector<128xf32>
    %37 = vector.multi_reduction <add>, %35, %cst_24 [0] : vector<512x128xf32> to vector<128xf32>
    %38 = vector.shape_cast %37 : vector<128xf32> to vector<1x128xf32>
    %39 = arith.addf %36, %38 : vector<1x128xf32>
    %c0_25 = arith.constant 0 : index
    %c0_26 = arith.constant 0 : index
    %40 = vector.load %arg6[%c0_25, %c0_26] : memref<8x128xf32, #tpu.memory_space<vmem>>, vector<1x128xf32>
    tpu.vector_store %arg6[%c0_25, %c0_26], %39 {strides = array<i32>} : memref<8x128xf32, #tpu.memory_space<vmem>>, vector<1x128xf32>,
    %c1 = arith.constant 1 : index
    %c0_27 = arith.constant 0 : index
    %41 = vector.load %arg6[%c1, %c0_27] : memref<8x128xf32, #tpu.memory_space<vmem>>, vector<1x128xf32>
    %42 = arith.mulf %35, %32 : vector<512x128xf32>
    %cst_28 = arith.constant dense<0.000000e+00> : vector<128xf32>
    %43 = vector.multi_reduction <add>, %42, %cst_28 [0] : vector<512x128xf32> to vector<128xf32>
    %44 = vector.shape_cast %43 : vector<128xf32> to vector<1x128xf32>
    %45 = arith.addf %41, %44 : vector<1x128xf32>
    %c1_29 = arith.constant 1 : index
    %c0_30 = arith.constant 0 : index
    %46 = vector.load %arg6[%c1_29, %c0_30] : memref<8x128xf32, #tpu.memory_space<vmem>>, vector<1x128xf32>
    tpu.vector_store %arg6[%c1_29, %c0_30], %45 {strides = array<i32>} : memref<8x128xf32, #tpu.memory_space<vmem>>, vector<1x128xf32>,
    %47 = arith.truncf %32 : vector<512x128xf32> to vector<512x128xbf16>
    %c0_31 = arith.constant 0 : index
    %c0_32 = arith.constant 0 : index
    %48 = vector.load %arg5[%c0_31, %c0_32] : memref<512x128xbf16, #tpu.memory_space<vmem>>, vector<512x128xbf16>
    tpu.vector_store %arg5[%c0_31, %c0_32], %47 {strides = array<i32>} : memref<512x128xbf16, #tpu.memory_space<vmem>>, vector<512x128xbf16>,
    return
  }
  func.func @transform_1(%arg0: i32, %arg1: i32) -> (i32, i32, i32) {
    %c0_i32 = arith.constant 0 : i32
    %c0_i32_0 = arith.constant 0 : i32
    %c0_i32_1 = arith.constant 0 : i32
    %c0_i32_2 = arith.constant 0 : i32
    return %c0_i32, %c0_i32_0, %c0_i32_1 : i32, i32, i32
  }
  func.func @transform_2(%arg0: i32, %arg1: i32) -> (i32, i32) {
    %c1_i32 = arith.constant 1 : i32
    %0 = arith.muli %arg0, %c1_i32 : i32
    %1 = arith.addi %0, %arg1 : i32
    %c0_i32 = arith.constant 0 : i32
    %c0_i32_0 = arith.constant 0 : i32
    return %1, %c0_i32 : i32, i32
  }
  func.func @transform_3(%arg0: i32, %arg1: i32) -> (i32, i32) {
    %c1_i32 = arith.constant 1 : i32
    %0 = arith.muli %arg0, %c1_i32 : i32
    %1 = arith.addi %0, %arg1 : i32
    %c0_i32 = arith.constant 0 : i32
    %c0_i32_0 = arith.constant 0 : i32
    return %1, %c0_i32 : i32, i32
  }
  func.func @transform_4(%arg0: i32, %arg1: i32) -> (i32, i32) {
    %c0_i32 = arith.constant 0 : i32
    %c0_i32_0 = arith.constant 0 : i32
    return %arg0, %c0_i32 : i32, i32
  }
}

</mosaic_0001>

<bundles_post_ra>
// kernel: tpu_custom_call.1
= control target key start
LH: loop header
LB: loop body
LE: loop exit
PB: predicated region body
PF: predicated region fallthrough
CT: control target
= control target key end

     0   :  { %10 = vsyncpa [#allocation5], 0  ;;  %s4016_s0 = inlined_call_operand.vmem [shape: bf16[1,512,256], index: 0, kind: input, shape index: {}]   ;;  %s4017_s1 = inlined_call_operand.hbm [shape: bf16[1,256,128], index: 1, kind: input, shape index: {}]   ;;  %s4018_s2 = inlined_call_operand.vmem [shape: f32[512,1], index: 2, kind: input, shape index: {}]   ;;  %s4019_s3 = inlined_call_operand.hbm [shape: bf16[512,128], index: 3, kind: output, shape index: {0}]   ;;  %s4020_s4 = inlined_call_operand.hbm [shape: f32[8,128], index: 4, kind: output, shape index: {1}]  }
   0x1   :  { %11 = vsyncpa [#allocation6], 0 }
   0x2   :  { %12 = vsyncpa [#allocation9], 0  ;;  %s2888_s15 = smov [#allocation4]  }
   0x3   :  { %s18_s16 = sshll.u32 %s2888_s15, 4  ;;  %s19_s16 = int_to_ptr.vmem [resolvable:$true] %s18_s16 }
   0x4   :  { %s2828_s17 = scalar_lea.vmem %s19_s16, 2048  ;;  %p2833_p1 = scmp.lt.s32.totalorder %s19_s16, %s19_s16 }
   0x5   :  { %p2829_p0 = scmp.ne.s32.totalorder %s19_s16, %s2828_s17  ;;  %p2834_p2 = scmp.lt.s32.totalorder %s2828_s17, %s2828_s17 }
   0x7   :  { %p2835_p3 = por %p2834_p2, %p2833_p1 }
   0x9   :  { %p2836_p4 = pnand %p2835_p3, %p2829_p0 }
   0xb   :  { %2839 = shalt.err (!%p2836_p4)
}
   0xc   :  { %s2889_s18 = smov 64   ;;  %s2890_s19 = smov 4  }
   0xd   :  { %24 = dma.hbm_to_vmem [thread:$0]  %s4017_s1, 2048, %s19_s16, [#allocation5], %s2889_s18, %s2889_s18, %s2890_s19  }
   0xe   :  { %2880 = dma.done.wait [#allocation5], 2048  }
   0xf   :  { %2881 = vsyncadd [#allocation5], 4294965248  ;;  %v2929_v0 = vld [vmem:[%s4016_s0] sm:$0xff]  ;;  %v2934_v1 = vld [vmem:[%s4016_s0 + $0x8] sm:$0xff] }
  0x10   :  { %v2939_v2 = vld [vmem:[%s4016_s0 + $0x10] sm:$0xff]  ;;  %v2944_v3 = vld [vmem:[%s4016_s0 + $0x18] sm:$0xff]  ;;  %v2949_v4 = vld [vmem:[%s4016_s0 + $0x20] sm:$0xff] }
  0x11   :  { %v2954_v5 = vld [vmem:[%s4016_s0 + $0x28] sm:$0xff]  ;;  %v2959_v6 = vld [vmem:[%s4016_s0 + $0x30] sm:$0xff]  ;;  %v2964_v7 = vld [vmem:[%s4016_s0 + $0x38] sm:$0xff] }
  0x12   :  { %v2969_v8 = vld [vmem:[%s4016_s0 + $0x40] sm:$0xff]  ;;  %v2974_v9 = vld [vmem:[%s4016_s0 + $0x48] sm:$0xff]  ;;  %v2979_v10 = vld [vmem:[%s4016_s0 + $0x50] sm:$0xff] }
  0x13   :  { %v2984_v11 = vld [vmem:[%s4016_s0 + $0x58] sm:$0xff]  ;;  %v2989_v12 = vld [vmem:[%s4016_s0 + $0x60] sm:$0xff]  ;;  %v2994_v13 = vld [vmem:[%s4016_s0 + $0x68] sm:$0xff] }
  0x14   :  { %v2999_v14 = vld [vmem:[%s4016_s0 + $0x70] sm:$0xff]  ;;  %v3004_v15 = vld [vmem:[%s4016_s0 + $0x78] sm:$0xff]  ;;  %v3009_v16 = vld [vmem:[%s4016_s0 + $0x80] sm:$0xff] }
  0x15   :  { %v3014_v17 = vld [vmem:[%s4016_s0 + $0x88] sm:$0xff]  ;;  %v3019_v18 = vld [vmem:[%s4016_s0 + $0x90] sm:$0xff]  ;;  %v3024_v19 = vld [vmem:[%s4016_s0 + $0x98] sm:$0xff] }
  0x16   :  { %v3029_v20 = vld [vmem:[%s4016_s0 + $0xa0] sm:$0xff]  ;;  %v3034_v21 = vld [vmem:[%s4016_s0 + $0xa8] sm:$0xff]  ;;  %v3039_v22 = vld [vmem:[%s4016_s0 + $0xb0] sm:$0xff] }
  0x17   :  { %v3044_v23 = vld [vmem:[%s4016_s0 + $0xb8] sm:$0xff]  ;;  %v3049_v24 = vld [vmem:[%s4016_s0 + $0xc0] sm:$0xff]  ;;  %v3054_v25 = vld [vmem:[%s4016_s0 + $0xc8] sm:$0xff] }
  0x18   :  { %v3059_v26 = vld [vmem:[%s4016_s0 + $0xd0] sm:$0xff]  ;;  %v3064_v27 = vld [vmem:[%s4016_s0 + $0xd8] sm:$0xff]  ;;  %v3069_v28 = vld [vmem:[%s4016_s0 + $0xe0] sm:$0xff] }
  0x19   :  { %4043 = vst [vmem:[#allocation16_spill] sm:$0xff] %v3069_v28  ;;  %v3074_v29 = vld [vmem:[%s4016_s0 + $0xe8] sm:$0xff]  ;;  %v3079_v30 = vld [vmem:[%s4016_s0 + $0xf0] sm:$0xff]  ;;  %v3084_v31 = vld [vmem:[%s4016_s0 + $0xf8] sm:$0xff] }
  0x1a   :  { %4044 = vst [vmem:[#allocation17_spill] sm:$0xff] %v3074_v29  ;;  %4045 = vst [vmem:[#allocation18_spill] sm:$0xff] %v3079_v30  ;;  %v3089_v32 = vld [vmem:[%s4016_s0 + $0x100] sm:$0xff]  ;;  %v3094_v33 = vld [vmem:[%s4016_s0 + $0x108] sm:$0xff] }
  0x1b   :  { %4046 = vst [vmem:[#allocation19_spill] sm:$0xff] %v3084_v31  ;;  %v3099_v34 = vld [vmem:[%s4016_s0 + $0x110] sm:$0xff]  ;;  %v3104_v35 = vld [vmem:[%s4016_s0 + $0x118] sm:$0xff]  ;;  %v3109_v36 = vld [vmem:[%s4016_s0 + $0x120] sm:$0xff] }
  0x1c   :  { %v3114_v37 = vld [vmem:[%s4016_s0 + $0x128] sm:$0xff]  ;;  %v3119_v38 = vld [vmem:[%s4016_s0 + $0x130] sm:$0xff]  ;;  %v3124_v39 = vld [vmem:[%s4016_s0 + $0x138] sm:$0xff] }
  0x1d   :  { %v3129_v40 = vld [vmem:[%s4016_s0 + $0x140] sm:$0xff]  ;;  %v3134_v41 = vld [vmem:[%s4016_s0 + $0x148] sm:$0xff]  ;;  %v3139_v42 = vld [vmem:[%s4016_s0 + $0x150] sm:$0xff] }
  0x1e   :  { %v3144_v43 = vld [vmem:[%s4016_s0 + $0x158] sm:$0xff]  ;;  %v3149_v44 = vld [vmem:[%s4016_s0 + $0x160] sm:$0xff]  ;;  %v3154_v45 = vld [vmem:[%s4016_s0 + $0x168] sm:$0xff] }
  0x1f   :  { %v3159_v46 = vld [vmem:[%s4016_s0 + $0x170] sm:$0xff]  ;;  %v3164_v47 = vld [vmem:[%s4016_s0 + $0x178] sm:$0xff]  ;;  %v3169_v48 = vld [vmem:[%s4016_s0 + $0x180] sm:$0xff] }
  0x20   :  { %v3174_v49 = vld [vmem:[%s4016_s0 + $0x188] sm:$0xff]  ;;  %v3179_v50 = vld [vmem:[%s4016_s0 + $0x190] sm:$0xff]  ;;  %v3184_v51 = vld [vmem:[%s4016_s0 + $0x198] sm:$0xff] }
  0x21   :  { %v3189_v52 = vld [vmem:[%s4016_s0 + $0x1a0] sm:$0xff]  ;;  %v3194_v53 = vld [vmem:[%s4016_s0 + $0x1a8] sm:$0xff]  ;;  %v3199_v54 = vld [vmem:[%s4016_s0 + $0x1b0] sm:$0xff] }
  0x22   :  { %v3204_v55 = vld [vmem:[%s4016_s0 + $0x1b8] sm:$0xff]  ;;  %v3209_v56 = vld [vmem:[%s4016_s0 + $0x1c0] sm:$0xff]  ;;  %v3214_v57 = vld [vmem:[%s4016_s0 + $0x1c8] sm:$0xff] }
  0x23   :  { %v3219_v58 = vld [vmem:[%s4016_s0 + $0x1d0] sm:$0xff]  ;;  %v3224_v59 = vld [vmem:[%s4016_s0 + $0x1d8] sm:$0xff]  ;;  %v3229_v60 = vld [vmem:[%s4016_s0 + $0x1e0] sm:$0xff] }
  0x24   :  { %4047 = vst [vmem:[#allocation20_spill] sm:$0xff] %v3229_v60  ;;  %v3234_v61 = vld [vmem:[%s4016_s0 + $0x1e8] sm:$0xff]  ;;  %v3239_v62 = vld [vmem:[%s4016_s0 + $0x1f0] sm:$0xff]  ;;  %v3244_v63 = vld [vmem:[%s4016_s0 + $0x1f8] sm:$0xff] }
  0x25   :  { %4048 = vst [vmem:[#allocation21_spill] sm:$0xff] %v3234_v61  ;;  %4049 = vst [vmem:[#allocation22_spill] sm:$0xff] %v3239_v62 }
  0x26   :  { %4050 = vst [vmem:[#allocation23_spill] sm:$0xff] %v3244_v63 }
  0x27   :  { %242 = vsyncadd [#allocation3], 8192  ;;  %v2891_v30 = vmov 0.0  }
  0x28   :  { %243 = vst [vmem:[#allocation8] sm:$0xff] %v2891_v30 }
  0x29   :  { %2882 = dma.done.wait [#allocation3], 8192 }
  0x2a   :  { %2883 = vsyncadd [#allocation3], 4294959104  ;;  %v2363_v31 = vcombine.high %v2929_v0, %v2934_v1  ;;  %v2395_v60 = vcombine.high %v3089_v32, %v3094_v33  ;;  %v4027_v61 = vmov 0   ;;  %v2804_v30 = vld [vmem:[#allocation4 + $0x38] sm:$0xff]   ;;  %v2805_v62 = vld [vmem:[#allocation4 + $0x30] sm:$0xff]   ;;  %v4051_v28 = vmov 0  }
  0x2b   :  { %952 = vmatprep.subr.bf16.mxu0 %v4027_v61  ;;  %2763 = vmatprep.subr.bf16.mxu1 %v4027_v61  ;;  %v2806_v63 = vld [vmem:[#allocation4 + $0x28] sm:$0xff]   ;;  %v2362_v29 = vcombine.low %v2929_v0, %v2934_v1  ;;  %v1267_v1 = vld [vmem:[%s4018_s2 + $0xd0] sm:$0xff] }
  0x2c   :  { %984 = vmatprep.mubr.bf16.mxu0 %v2363_v31  ;;  %1112 = vmatprep.mubr.bf16.mxu1 %v2395_v60  ;;  %v2807_v31 = vld [vmem:[#allocation4 + $0x20] sm:$0xff]   ;;  %v2808_v60 = vld [vmem:[#allocation4 + $0x18] sm:$0xff]   ;;  %v1266_v0 = vld [vmem:[%s4018_s2 + $0xc8] sm:$0xff] }
  0x2d   :  { %2802 = vset.pattern.permute.xlu0 %v4027_v61  ;;  %2803 = vset.pattern.permute.xlu1 %v4027_v61 }
  0x2e   :  { %953 = vmatpush1.bf16.msra.mxu0 %v2804_v30  ;;  %2779 = vmatpush1.bf16.msra.mxu1 %v2804_v30  ;;  %v2809_v30 = vld [vmem:[#allocation4 + $0x10] sm:$0xff]  }
  0x2f   :  { %954 = vmatprep.subr.bf16.mxu0 %v4027_v61  ;;  %2764 = vmatprep.subr.bf16.mxu1 %v4027_v61 }
  0x32   :  { %955 = vmatpush1.bf16.msra.mxu0 %v2805_v62  ;;  %2780 = vmatpush1.bf16.msra.mxu1 %v2805_v62  ;;  %v1241_v62 = vld [vmem:[%s4018_s2] sm:$0xff] }
  0x33   :  { %956 = vmatprep.subr.bf16.mxu0 %v4027_v61  ;;  %2765 = vmatprep.subr.bf16.mxu1 %v4027_v61 }
  0x34   :  { %1307 = vperm.xlu0 %2802, %v1241_v62   ;;  %v2810_v62 = vld [vmem:[#allocation4 + $0x8] sm:$0xff]  }
  0x36   :  { %957 = vmatpush1.bf16.msra.mxu0 %v2806_v63  ;;  %2781 = vmatpush1.bf16.msra.mxu1 %v2806_v63  ;;  %v1243_v63 = vld [vmem:[%s4018_s2 + $0x10] sm:$0xff] }
  0x37   :  { %958 = vmatprep.subr.bf16.mxu0 %v4027_v61  ;;  %2766 = vmatprep.subr.bf16.mxu1 %v4027_v61 }
  0x38   :  { %1317 = vperm.xlu1 %2803, %v1243_v63   ;;  %v1246_v63 = vld [vmem:[%s4018_s2 + $0x28] sm:$0xff] }
  0x3a   :  { %959 = vmatpush1.bf16.msra.mxu0 %v2807_v31  ;;  %2782 = vmatpush1.bf16.msra.mxu1 %v2807_v31  ;;  %v1242_v31 = vld [vmem:[%s4018_s2 + $0x8] sm:$0xff] }
  0x3b   :  { %960 = vmatprep.subr.bf16.mxu0 %v4027_v61  ;;  %2767 = vmatprep.subr.bf16.mxu1 %v4027_v61  ;;  %v1244_v61 = vld [vmem:[%s4018_s2 + $0x18] sm:$0xff] }
  0x3c   :  { %1312 = vperm.xlu0 %2802, %v1242_v31   ;;  %1322 = vperm.xlu1 %2803, %v1244_v61   ;;  %v2811_v61 = vld [vmem:[#allocation4] sm:$0xff]   ;;  %v1248_v31 = vld [vmem:[%s4018_s2 + $0x38] sm:$0xff] }
  0x3e   :  { %961 = vmatpush1.bf16.msra.mxu0 %v2808_v60  ;;  %2783 = vmatpush1.bf16.msra.mxu1 %v2808_v60  ;;  %v1245_v60 = vld [vmem:[%s4018_s2 + $0x20] sm:$0xff] }
  0x3f   :  { %962 = vmatprep.subr.bf16.mxu0 %v4051_v28  ;;  %2768 = vmatprep.subr.bf16.mxu1 %v4051_v28 }
  0x40   :  { %1327 = vperm.xlu0 %2802, %v1245_v60   ;;  %1332 = vperm.xlu1 %2803, %v1246_v63   ;;  %v2812_v60 = vld [vmem:[#allocation4 + $0x78] sm:$0xff]   ;;  %v1250_v63 = vld [vmem:[%s4018_s2 + $0x48] sm:$0xff] }
  0x42   :  { %963 = vmatpush1.bf16.msra.mxu0 %v2809_v30  ;;  %2784 = vmatpush1.bf16.msra.mxu1 %v2809_v30  ;;  %v1247_v30 = vld [vmem:[%s4018_s2 + $0x30] sm:$0xff] }
  0x43   :  { %964 = vmatprep.subr.bf16.mxu0 %v4051_v28  ;;  %2769 = vmatprep.subr.bf16.mxu1 %v4051_v28 }
  0x44   :  { %1337 = vperm.xlu0 %2802, %v1247_v30   ;;  %1342 = vperm.xlu1 %2803, %v1248_v31   ;;  %v2813_v30 = vld [vmem:[#allocation4 + $0x70] sm:$0xff]   ;;  %v1252_v31 = vld [vmem:[%s4018_s2 + $0x58] sm:$0xff] }
  0x46   :  { %965 = vmatpush1.bf16.msra.mxu0 %v2810_v62  ;;  %2785 = vmatpush1.bf16.msra.mxu1 %v2810_v62  ;;  %v1249_v62 = vld [vmem:[%s4018_s2 + $0x40] sm:$0xff] }
  0x47   :  { %966 = vmatprep.subr.bf16.mxu0 %v4051_v28  ;;  %2770 = vmatprep.subr.bf16.mxu1 %v4051_v28 }
  0x48   :  { %1347 = vperm.xlu0 %2802, %v1249_v62   ;;  %1352 = vperm.xlu1 %2803, %v1250_v63   ;;  %v2814_v62 = vld [vmem:[#allocation4 + $0x68] sm:$0xff]  }
  0x49   :  { %v1254_v63 = vld [vmem:[%s4018_s2 + $0x68] sm:$0xff] }
  0x4a   :  { %967 = vmatpush1.bf16.msra.mxu0 %v2811_v61  ;;  %2786 = vmatpush1.bf16.msra.mxu1 %v2811_v61  ;;  %v1251_v61 = vld [vmem:[%s4018_s2 + $0x50] sm:$0xff] }
  0x4b   :  { %968 = vmatprep.subr.bf16.mxu0 %v4051_v28  ;;  %2771 = vmatprep.subr.bf16.mxu1 %v4051_v28 }
  0x4c   :  { %1357 = vperm.xlu0 %2802, %v1251_v61   ;;  %1362 = vperm.xlu1 %2803, %v1252_v31   ;;  %v2815_v61 = vld [vmem:[#allocation4 + $0x60] sm:$0xff]   ;;  %v1256_v31 = vld [vmem:[%s4018_s2 + $0x78] sm:$0xff] }
  0x4e   :  { %969 = vmatpush2.bf16.msra.mxu0 %v2812_v60  ;;  %2787 = vmatpush2.bf16.msra.mxu1 %v2812_v60  ;;  %v1253_v60 = vld [vmem:[%s4018_s2 + $0x60] sm:$0xff] }
  0x4f   :  { %970 = vmatprep.subr.bf16.mxu0 %v4051_v28  ;;  %2772 = vmatprep.subr.bf16.mxu1 %v4051_v28 }
  0x50   :  { %1367 = vperm.xlu0 %2802, %v1253_v60   ;;  %1372 = vperm.xlu1 %2803, %v1254_v63   ;;  %v2816_v60 = vld [vmem:[#allocation4 + $0x58] sm:$0xff]   ;;  %v1258_v63 = vld [vmem:[%s4018_s2 + $0x88] sm:$0xff] }
  0x52   :  { %971 = vmatpush2.bf16.msra.mxu0 %v2813_v30  ;;  %2788 = vmatpush2.bf16.msra.mxu1 %v2813_v30  ;;  %v1255_v30 = vld [vmem:[%s4018_s2 + $0x70] sm:$0xff] }
  0x53   :  { %972 = vmatprep.subr.bf16.mxu0 %v4051_v28  ;;  %2773 = vmatprep.subr.bf16.mxu1 %v4051_v28 }
  0x54   :  { %1377 = vperm.xlu0 %2802, %v1255_v30   ;;  %1382 = vperm.xlu1 %2803, %v1256_v31   ;;  %v2817_v30 = vld [vmem:[#allocation4 + $0x50] sm:$0xff]   ;;  %v1260_v31 = vld [vmem:[%s4018_s2 + $0x98] sm:$0xff] }
  0x56   :  { %973 = vmatpush2.bf16.msra.mxu0 %v2814_v62  ;;  %2789 = vmatpush2.bf16.msra.mxu1 %v2814_v62  ;;  %v1257_v62 = vld [vmem:[%s4018_s2 + $0x80] sm:$0xff] }
  0x57   :  { %974 = vmatprep.subr.bf16.mxu0 %v4051_v28  ;;  %2774 = vmatprep.subr.bf16.mxu1 %v4051_v28 }
  0x58   :  { %1387 = vperm.xlu0 %2802, %v1257_v62   ;;  %1392 = vperm.xlu1 %2803, %v1258_v63   ;;  %v2818_v62 = vld [vmem:[#allocation4 + $0x48] sm:$0xff]  }
  0x59   :  { %v1262_v63 = vld [vmem:[%s4018_s2 + $0xa8] sm:$0xff] }
  0x5a   :  { %975 = vmatpush2.bf16.msra.mxu0 %v2815_v61  ;;  %2790 = vmatpush2.bf16.msra.mxu1 %v2815_v61  ;;  %v1259_v61 = vld [vmem:[%s4018_s2 + $0x90] sm:$0xff] }
  0x5b   :  { %976 = vmatprep.subr.bf16.mxu0 %v4051_v28  ;;  %2775 = vmatprep.subr.bf16.mxu1 %v4051_v28 }
  0x5c   :  { %1397 = vperm.xlu0 %2802, %v1259_v61   ;;  %1402 = vperm.xlu1 %2803, %v1260_v31   ;;  %v2819_v61 = vld [vmem:[#allocation4 + $0x40] sm:$0xff]   ;;  %v1264_v31 = vld [vmem:[%s4018_s2 + $0xb8] sm:$0xff] }
  0x5e   :  { %977 = vmatpush2.bf16.msra.mxu0 %v2816_v60  ;;  %2791 = vmatpush2.bf16.msra.mxu1 %v2816_v60  ;;  %v1261_v60 = vld [vmem:[%s4018_s2 + $0xa0] sm:$0xff] }
  0x5f   :  { %978 = vmatprep.subr.bf16.mxu0 %v4051_v28  ;;  %2776 = vmatprep.subr.bf16.mxu1 %v4051_v28 }
  0x60   :  { %1407 = vperm.xlu0 %2802, %v1261_v60   ;;  %1412 = vperm.xlu1 %2803, %v1262_v63   ;;  %v2394_v60 = vcombine.low %v3089_v32, %v3094_v33  ;;  %v2397_v63 = vcombine.high %v3099_v34, %v3104_v35  ;;  %v1268_v32 = vld [vmem:[%s4018_s2 + $0xd8] sm:$0xff]  ;;  %v2364_v33 = vcombine.low %v2939_v2, %v2944_v3 }
  0x62   :  { %979 = vmatpush2.bf16.msra.mxu0 %v2817_v30  ;;  %2792 = vmatpush2.bf16.msra.mxu1 %v2817_v30  ;;  %v1263_v30 = vld [vmem:[%s4018_s2 + $0xb0] sm:$0xff] }
  0x63   :  { %980 = vmatprep.subr.bf16.mxu0 %v4051_v28  ;;  %2777 = vmatprep.subr.bf16.mxu1 %v4051_v28 }
  0x64   :  { %1417 = vperm.xlu0 %2802, %v1263_v30   ;;  %1422 = vperm.xlu1 %2803, %v1264_v31   ;;  %v2399_v30 = vcombine.high %v3109_v36, %v3114_v37  ;;  %v1269_v31 = vld [vmem:[%s4018_s2 + $0xe0] sm:$0xff] }
  0x66   :  { %981 = vmatpush2.bf16.msra.mxu0 %v2818_v62  ;;  %2793 = vmatpush2.bf16.msra.mxu1 %v2818_v62  ;;  %v2365_v62 = vcombine.high %v2939_v2, %v2944_v3  ;;  %v1271_v2 = vld [vmem:[%s4018_s2 + $0xf0] sm:$0xff]  ;;  %v1272_v3 = vld [vmem:[%s4018_s2 + $0xf8] sm:$0xff] }
  0x67   :  { %982 = vmatprep.subr.bf16.mxu0 %v4051_v28  ;;  %2778 = vmatprep.subr.bf16.mxu1 %v4051_v28  ;;  %v1265_v28 = vld [vmem:[%s4018_s2 + $0xc0] sm:$0xff] }
  0x68   :  { %1427 = vperm.xlu0 %2802, %v1265_v28   ;;  %1432 = vperm.xlu1 %2803, %v1266_v0   ;;  %v1273_v28 = vld [vmem:[%s4018_s2 + $0x100] sm:$0xff]  ;;  %v1274_v0 = vld [vmem:[%s4018_s2 + $0x108] sm:$0xff] }
  0x6a   :  { %983 = vmatpush2.bf16.msra.mxu0 %v2819_v61  ;;  %2794 = vmatpush2.bf16.msra.mxu1 %v2819_v61  ;;  %v2396_v61 = vcombine.low %v3099_v34, %v3104_v35  ;;  %v2366_v34 = vcombine.low %v2949_v4, %v2954_v5  ;;  %v2398_v35 = vcombine.low %v3109_v36, %v3114_v37 }
  0x6b   :  { %v2368_v36 = vcombine.low %v2959_v6, %v2964_v7  ;;  %v2400_v37 = vcombine.low %v3119_v38, %v3124_v39 }
  0x6c   :  { %1437 = vperm.xlu0 %2802, %v1267_v1   ;;  %1442 = vperm.xlu1 %2803, %v1268_v32   ;;  %v2371_v1 = vcombine.high %v2969_v8, %v2974_v9  ;;  %v2403_v32 = vcombine.high %v3129_v40, %v3134_v41 }
  0x6d   :  { %985 = vmatmul.mubr.bf16.vlgmr.msra.gmra.mxu0 %v2362_v29  ;;  %1113 = vmatmul.mubr.bf16.vlgmr.msra.gmra.mxu1 %v2394_v60  ;;  %v2367_v29 = vcombine.high %v2949_v4, %v2954_v5  ;;  %v1270_v60 = vld [vmem:[%s4018_s2 + $0xe8] sm:$0xff]  ;;  %v1275_v4 = vld [vmem:[%s4018_s2 + $0x110] sm:$0xff]  ;;  %v1276_v5 = vld [vmem:[%s4018_s2 + $0x118] sm:$0xff] }
  0x6e   :  { %992 = vmatprep.mubr.bf16.mxu0 %v2365_v62  ;;  %1120 = vmatprep.mubr.bf16.mxu1 %v2397_v63  ;;  %v2369_v62 = vcombine.high %v2959_v6, %v2964_v7  ;;  %v2401_v63 = vcombine.high %v3119_v38, %v3124_v39  ;;  %v1279_v6 = vld [vmem:[%s4018_s2 + $0x130] sm:$0xff]  ;;  %v1280_v7 = vld [vmem:[%s4018_s2 + $0x138] sm:$0xff]  ;;  %v2370_v38 = vcombine.low %v2969_v8, %v2974_v9 }
  0x6f   :  { %v2402_v39 = vcombine.low %v3129_v40, %v3134_v41  ;;  %v1283_v8 = vld [vmem:[%s4018_s2 + $0x150] sm:$0xff]  ;;  %v1284_v9 = vld [vmem:[%s4018_s2 + $0x158] sm:$0xff]  ;;  %v2372_v40 = vcombine.low %v2979_v10, %v2984_v11  ;;  %v2404_v41 = vcombine.low %v3139_v42, %v3144_v43 }
  0x70   :  { %1447 = vperm.xlu0 %2802, %v1269_v31   ;;  %1452 = vperm.xlu1 %2803, %v1270_v60   ;;  %v1281_v31 = vld [vmem:[%s4018_s2 + $0x140] sm:$0xff]  ;;  %v1282_v60 = vld [vmem:[%s4018_s2 + $0x148] sm:$0xff] }
  0x74   :  { %1457 = vperm.xlu0 %2802, %v1271_v2   ;;  %1462 = vperm.xlu1 %2803, %v1272_v3   ;;  %v2375_v2 = vcombine.high %v2989_v12, %v2994_v13  ;;  %v2407_v3 = vcombine.high %v3149_v44, %v3154_v45 }
  0x75   :  { %993 = vmatmul.mubr.bf16.gmra.mxu0 %v2364_v33  ;;  %1121 = vmatmul.mubr.bf16.gmra.mxu1 %v2396_v61  ;;  %v1277_v33 = vld [vmem:[%s4018_s2 + $0x120] sm:$0xff]  ;;  %v1278_v61 = vld [vmem:[%s4018_s2 + $0x128] sm:$0xff] }
  0x76   :  { %1000 = vmatprep.mubr.bf16.mxu0 %v2367_v29  ;;  %1128 = vmatprep.mubr.bf16.mxu1 %v2399_v30  ;;  %v2373_v29 = vcombine.high %v2979_v10, %v2984_v11  ;;  %v2405_v30 = vcombine.high %v3139_v42, %v3144_v43  ;;  %v1287_v10 = vld [vmem:[%s4018_s2 + $0x170] sm:$0xff]  ;;  %v1288_v11 = vld [vmem:[%s4018_s2 + $0x178] sm:$0xff]  ;;  %v2374_v42 = vcombine.low %v2989_v12, %v2994_v13 }
  0x77   :  { %v2406_v43 = vcombine.low %v3149_v44, %v3154_v45  ;;  %v1291_v12 = vld [vmem:[%s4018_s2 + $0x190] sm:$0xff]  ;;  %v1292_v13 = vld [vmem:[%s4018_s2 + $0x198] sm:$0xff]  ;;  %v2376_v44 = vcombine.low %v2999_v14, %v3004_v15  ;;  %v2408_v45 = vcombine.low %v3159_v46, %v3164_v47 }
  0x78   :  { %1467 = vperm.xlu0 %2802, %v1273_v28   ;;  %1472 = vperm.xlu1 %2803, %v1274_v0   ;;  %v1289_v28 = vld [vmem:[%s4018_s2 + $0x180] sm:$0xff]  ;;  %v1290_v0 = vld [vmem:[%s4018_s2 + $0x188] sm:$0xff] }
  0x7c   :  { %1477 = vperm.xlu0 %2802, %v1275_v4   ;;  %1482 = vperm.xlu1 %2803, %v1276_v5   ;;  %v2379_v4 = vcombine.high %v3009_v16, %v3014_v17  ;;  %v2411_v5 = vcombine.high %v3169_v48, %v3174_v49 }
  0x7d   :  { %1001 = vmatmul.mubr.bf16.gmra.mxu0 %v2366_v34  ;;  %1129 = vmatmul.mubr.bf16.gmra.mxu1 %v2398_v35  ;;  %v1285_v34 = vld [vmem:[%s4018_s2 + $0x160] sm:$0xff]  ;;  %v1286_v35 = vld [vmem:[%s4018_s2 + $0x168] sm:$0xff] }
  0x7e   :  { %1008 = vmatprep.mubr.bf16.mxu0 %v2369_v62  ;;  %1136 = vmatprep.mubr.bf16.mxu1 %v2401_v63  ;;  %v2377_v62 = vcombine.high %v2999_v14, %v3004_v15  ;;  %v2409_v63 = vcombine.high %v3159_v46, %v3164_v47  ;;  %v1295_v14 = vld [vmem:[%s4018_s2 + $0x1b0] sm:$0xff]  ;;  %v1296_v15 = vld [vmem:[%s4018_s2 + $0x1b8] sm:$0xff]  ;;  %v2378_v46 = vcombine.low %v3009_v16, %v3014_v17 }
  0x7f   :  { %v2410_v47 = vcombine.low %v3169_v48, %v3174_v49  ;;  %v1299_v16 = vld [vmem:[%s4018_s2 + $0x1d0] sm:$0xff]  ;;  %v1300_v17 = vld [vmem:[%s4018_s2 + $0x1d8] sm:$0xff]  ;;  %v2380_v48 = vcombine.low %v3019_v18, %v3024_v19  ;;  %v2412_v49 = vcombine.low %v3179_v50, %v3184_v51 }
  0x80   :  { %1487 = vperm.xlu0 %2802, %v1277_v33   ;;  %1492 = vperm.xlu1 %2803, %v1278_v61   ;;  %v1297_v33 = vld [vmem:[%s4018_s2 + $0x1c0] sm:$0xff]  ;;  %v1298_v61 = vld [vmem:[%s4018_s2 + $0x1c8] sm:$0xff] }
  0x84   :  { %1497 = vperm.xlu0 %2802, %v1279_v6   ;;  %1502 = vperm.xlu1 %2803, %v1280_v7   ;;  %v2383_v6 = vcombine.high %v3029_v20, %v3034_v21  ;;  %v2415_v7 = vcombine.high %v3189_v52, %v3194_v53 }
  0x85   :  { %1009 = vmatmul.mubr.bf16.gmra.mxu0 %v2368_v36  ;;  %1137 = vmatmul.mubr.bf16.gmra.mxu1 %v2400_v37  ;;  %v1293_v36 = vld [vmem:[%s4018_s2 + $0x1a0] sm:$0xff]  ;;  %v1294_v37 = vld [vmem:[%s4018_s2 + $0x1a8] sm:$0xff] }
  0x86   :  { %1016 = vmatprep.mubr.bf16.mxu0 %v2371_v1  ;;  %1144 = vmatprep.mubr.bf16.mxu1 %v2403_v32  ;;  %v2381_v1 = vcombine.high %v3019_v18, %v3024_v19  ;;  %v2413_v32 = vcombine.high %v3179_v50, %v3184_v51  ;;  %v1303_v18 = vld [vmem:[%s4018_s2 + $0x1f0] sm:$0xff]  ;;  %v1304_v19 = vld [vmem:[%s4018_s2 + $0x1f8] sm:$0xff]  ;;  %v2382_v50 = vcombine.low %v3029_v20, %v3034_v21 }
  0x87   :  { %v2414_v51 = vcombine.low %v3189_v52, %v3194_v53  ;;  %v2416_v20 = vcombine.low %v3199_v54, %v3204_v55  ;;  %v2387_v21 = vcombine.high %v3049_v24, %v3054_v25  ;;  %v2419_v52 = vcombine.high %v3209_v56, %v3214_v57 }
  0x88   :  { %1507 = vperm.xlu0 %2802, %v1281_v31   ;;  %1512 = vperm.xlu1 %2803, %v1282_v60   ;;  %v2384_v31 = vcombine.low %v3039_v22, %v3044_v23  ;;  %v2386_v53 = vcombine.low %v3049_v24, %v3054_v25  ;;  %v2418_v60 = vcombine.low %v3209_v56, %v3214_v57  ;;  %v4052_v24 = vld [vmem:[#allocation17_spill] sm:$0xff]  ;;  %v4053_v25 = vld [vmem:[#allocation16_spill] sm:$0xff] }
  0x89   :  { %v4054_v56 = vld [vmem:[#allocation21_spill] sm:$0xff]  ;;  %v4055_v57 = vld [vmem:[#allocation20_spill] sm:$0xff] }
  0x8c   :  { %1517 = vperm.xlu0 %2802, %v1283_v8   ;;  %1522 = vperm.xlu1 %2803, %v1284_v9   ;;  %v2391_v8 = vcombine.high %v4053_v25, %v4052_v24  ;;  %v2423_v9 = vcombine.high %v4055_v57, %v4054_v56 }
  0x8d   :  { %1017 = vmatmul.mubr.bf16.gmra.mxu0 %v2370_v38  ;;  %1145 = vmatmul.mubr.bf16.gmra.mxu1 %v2402_v39  ;;  %v1301_v38 = vld [vmem:[%s4018_s2 + $0x1e0] sm:$0xff]  ;;  %v1302_v39 = vld [vmem:[%s4018_s2 + $0x1e8] sm:$0xff]  ;;  %s2893_s2 = smov [#allocation7]  }
  0x8e   :  { %1024 = vmatprep.mubr.bf16.mxu0 %v2373_v29  ;;  %1152 = vmatprep.mubr.bf16.mxu1 %v2405_v30  ;;  %v2385_v29 = vcombine.high %v3039_v22, %v3044_v23  ;;  %v2417_v30 = vcombine.high %v3199_v54, %v3204_v55  ;;  %v2389_v22 = vcombine.high %v3059_v26, %v3064_v27  ;;  %s2226_s23 = sshll.u32 %s2893_s2, 4  ;;  %s2227_s23 = int_to_ptr.vmem [resolvable:$true] %s2226_s23 }
  0x8f   :  { %v2421_v23 = vcombine.high %v3219_v58, %v3224_v59  ;;  %v2388_v54 = vcombine.low %v3059_v26, %v3064_v27  ;;  %v2420_v55 = vcombine.low %v3219_v58, %v3224_v59  ;;  %v4056_v26 = vld [vmem:[#allocation19_spill] sm:$0xff]  ;;  %v4057_v27 = vld [vmem:[#allocation18_spill] sm:$0xff]  ;;  %s2840_s24 = scalar_lea.vmem %s2227_s23, 4096  ;;  %p2845_p6 = scmp.lt.s32.totalorder %s2227_s23, %s2227_s23 }
  0x90   :  { %1527 = vperm.xlu0 %2802, %v1285_v34   ;;  %1532 = vperm.xlu1 %2803, %v1286_v35   ;;  %v4058_v58 = vld [vmem:[#allocation23_spill] sm:$0xff]  ;;  %v4059_v59 = vld [vmem:[#allocation22_spill] sm:$0xff]  ;;  %v2392_v34 = vcombine.low %v4057_v27, %v4056_v26  ;;  %p2841_p5 = scmp.ne.s32.totalorder %s2227_s23, %s2840_s24  ;;  %p2846_p7 = scmp.lt.s32.totalorder %s2840_s24, %s2840_s24 }
  0x91   :  { %v2424_v35 = vcombine.low %v4059_v59, %v4058_v58 }
  0x92   :  { %p2847_p8 = por %p2846_p7, %p2845_p6 }
  0x94   :  { %1537 = vperm.xlu0 %2802, %v1287_v10   ;;  %1542 = vperm.xlu1 %2803, %v1288_v11   ;;  %p2848_p9 = pnand %p2847_p8, %p2841_p5 }
  0x95   :  { %1025 = vmatmul.mubr.bf16.gmra.mxu0 %v2372_v40  ;;  %1153 = vmatmul.mubr.bf16.gmra.mxu1 %v2404_v41  ;;  %v2390_v40 = vcombine.low %v4053_v25, %v4052_v24  ;;  %v2422_v41 = vcombine.low %v4055_v57, %v4054_v56 }
  0x96   :  { %1032 = vmatprep.mubr.bf16.mxu0 %v2375_v2  ;;  %1160 = vmatprep.mubr.bf16.mxu1 %v2407_v3  ;;  %v2393_v2 = vcombine.high %v4057_v27, %v4056_v26  ;;  %v2425_v3 = vcombine.high %v4059_v59, %v4058_v58 }
  0x98   :  { %1547 = vperm.xlu0 %2802, %v1289_v28   ;;  %1552 = vperm.xlu1 %2803, %v1290_v0  }
  0x9c   :  { %1557 = vperm.xlu0 %2802, %v1291_v12   ;;  %1562 = vperm.xlu1 %2803, %v1292_v13  }
  0x9d   :  { %1033 = vmatmul.mubr.bf16.gmra.mxu0 %v2374_v42  ;;  %1161 = vmatmul.mubr.bf16.gmra.mxu1 %v2406_v43 }
  0x9e   :  { %1040 = vmatprep.mubr.bf16.mxu0 %v2377_v62  ;;  %1168 = vmatprep.mubr.bf16.mxu1 %v2409_v63 }
  0xa0   :  { %1567 = vperm.xlu0 %2802, %v1293_v36   ;;  %1572 = vperm.xlu1 %2803, %v1294_v37  }
  0xa4   :  { %1577 = vperm.xlu0 %2802, %v1295_v14   ;;  %1582 = vperm.xlu1 %2803, %v1296_v15  }
  0xa5   :  { %1041 = vmatmul.mubr.bf16.gmra.mxu0 %v2376_v44  ;;  %1169 = vmatmul.mubr.bf16.gmra.mxu1 %v2408_v45 }
  0xa6   :  { %1048 = vmatprep.mubr.bf16.mxu0 %v2379_v4  ;;  %1176 = vmatprep.mubr.bf16.mxu1 %v2411_v5 }
  0xa8   :  { %1587 = vperm.xlu0 %2802, %v1297_v33   ;;  %1592 = vperm.xlu1 %2803, %v1298_v61  }
  0xac   :  { %1597 = vperm.xlu0 %2802, %v1299_v16   ;;  %1602 = vperm.xlu1 %2803, %v1300_v17  }
  0xad   :  { %1049 = vmatmul.mubr.bf16.gmra.mxu0 %v2378_v46  ;;  %1177 = vmatmul.mubr.bf16.gmra.mxu1 %v2410_v47 }
  0xae   :  { %1056 = vmatprep.mubr.bf16.mxu0 %v2381_v1  ;;  %1184 = vmatprep.mubr.bf16.mxu1 %v2413_v32 }
  0xaf   :  { %v3600_v10 = vpop.permute.xlu0 %1307 }
  0xb0   :  { %1607 = vperm.xlu0 %2802, %v1301_v38   ;;  %1612 = vperm.xlu1 %2803, %v1302_v39  }
  0xb3   :  { %v3602_v11 = vpop.permute.xlu1 %1317 }
  0xb4   :  { %1617 = vperm.xlu0 %2802, %v1303_v18   ;;  %1622 = vperm.xlu1 %2803, %v1304_v19  }
  0xb5   :  { %1057 = vmatmul.mubr.bf16.gmra.mxu0 %v2380_v48  ;;  %1185 = vmatmul.mubr.bf16.gmra.mxu1 %v2412_v49 }
  0xb6   :  { %1064 = vmatprep.mubr.bf16.mxu0 %v2383_v6  ;;  %1192 = vmatprep.mubr.bf16.mxu1 %v2415_v7 }
  0xb7   :  { %v3608_v28 = vpop.permute.xlu0 %1312  ;;  %v3614_v13 = vpop.permute.xlu1 %1322 }
  0xbb   :  { %v3624_v14 = vpop.permute.xlu0 %1327  ;;  %v3626_v47 = vpop.permute.xlu1 %1332 }
  0xbd   :  { %1065 = vmatmul.mubr.bf16.gmra.mxu0 %v2382_v50  ;;  %1193 = vmatmul.mubr.bf16.gmra.mxu1 %v2414_v51 }
  0xbe   :  { %1072 = vmatprep.mubr.bf16.mxu0 %v2385_v29  ;;  %1200 = vmatprep.mubr.bf16.mxu1 %v2417_v30 }
  0xbf   :  { %v3636_v48 = vpop.permute.xlu0 %1337  ;;  %v3642_v7 = vpop.permute.xlu1 %1342 }
  0xc3   :  { %v3648_v50 = vpop.permute.xlu0 %1347 }
  0xc5   :  { %1073 = vmatmul.mubr.bf16.gmra.mxu0 %v2384_v31  ;;  %1201 = vmatmul.mubr.bf16.gmra.mxu1 %v2416_v20  ;;  %v3654_v20 = vpop.permute.xlu1 %1352 }
  0xc6   :  { %1080 = vmatprep.mubr.bf16.mxu0 %v2387_v21  ;;  %1208 = vmatprep.mubr.bf16.mxu1 %v2419_v52 }
  0xcd   :  { %1081 = vmatmul.mubr.bf16.gmra.mxu0 %v2386_v53  ;;  %1209 = vmatmul.mubr.bf16.gmra.mxu1 %v2418_v60 }
  0xce   :  { %1088 = vmatprep.mubr.bf16.mxu0 %v2389_v22  ;;  %1216 = vmatprep.mubr.bf16.mxu1 %v2421_v23  ;;  %v3660_v22 = vpop.permute.xlu0 %1357 }
  0xd5   :  { %1089 = vmatmul.mubr.bf16.gmra.mxu0 %v2388_v54  ;;  %1217 = vmatmul.mubr.bf16.gmra.mxu1 %v2420_v55  ;;  %v3666_v55 = vpop.permute.xlu1 %1362 }
  0xd6   :  { %1096 = vmatprep.mubr.bf16.mxu0 %v2391_v8  ;;  %1224 = vmatprep.mubr.bf16.mxu1 %v2423_v9 }
  0xd9   :  { %v3678_v27 = vpop.permute.xlu1 %1372 }
  0xdd   :  { %1097 = vmatmul.mubr.bf16.gmra.mxu0 %v2390_v40  ;;  %1225 = vmatmul.mubr.bf16.gmra.mxu1 %v2422_v41  ;;  %v3676_v40 = vpop.permute.xlu0 %1367 }
  0xde   :  { %1104 = vmatprep.mubr.bf16.mxu0 %v2393_v2  ;;  %1232 = vmatprep.mubr.bf16.mxu1 %v2425_v3 }
  0xe5   :  { %1105 = vmatmul.mubr.bf16.gmra.mxu0 %v2392_v34  ;;  %1233 = vmatmul.mubr.bf16.gmra.mxu1 %v2424_v35 }
 0x12d   :  { %v3604_v42 = vpop.f32.mrf.mxu0  ;;  %v3606_v43 = vpop.f32.mrf.mxu1 }
 0x12f   :  { %v988_v62 = vpop.f32.mrf.mxu0  ;;  %v1116_v63 = vpop.f32.mrf.mxu1 }
 0x130   :  { %v3688_v62 = vpop.permute.xlu0 %1377 }
 0x131   :  { %v3610_v0 = vpop.f32.mrf.mxu0  ;;  %v3612_v12 = vpop.f32.mrf.mxu1 }
 0x132   :  { %v2575_v44 = vpack.c.bf16 %v3610_v0, %v3604_v42  ;;  %v2655_v45 = vpack.c.bf16 %v3612_v12, %v3606_v43 }
 0x133   :  { %v991_v4 = vpop.f32.mrf.mxu0  ;;  %v1119_v5 = vpop.f32.mrf.mxu1 }
 0x134   :  { %2576 = vst [vmem:[#allocation7] sm:$0xff] %v2575_v44   ;;  %2747 = vst [vmem:[#allocation7 + $0x80] sm:$0xff] %v2655_v45   ;;  %v3694_v45 = vpop.permute.xlu1 %1382 }
 0x135   :  { %v3620_v36 = vpop.f32.mrf.mxu0  ;;  %v3622_v37 = vpop.f32.mrf.mxu1 }
 0x137   :  { %v996_v15 = vpop.f32.mrf.mxu0  ;;  %v1124_v46 = vpop.f32.mrf.mxu1 }
 0x139   :  { %v3628_v1 = vpop.f32.mrf.mxu0  ;;  %v3630_v32 = vpop.f32.mrf.mxu1 }
 0x13a   :  { %v2580_v33 = vpack.c.bf16 %v3628_v1, %v3620_v36  ;;  %v2660_v61 = vpack.c.bf16 %v3630_v32, %v3622_v37 }
 0x13b   :  { %v999_v16 = vpop.f32.mrf.mxu0  ;;  %v1127_v17 = vpop.f32.mrf.mxu1 }
 0x13c   :  { %2732 = vst [vmem:[#allocation7 + $0x8] sm:$0xff] %v2580_v33   ;;  %2748 = vst [vmem:[#allocation7 + $0x88] sm:$0xff] %v2660_v61   ;;  %v3700_v33 = vpop.permute.xlu0 %1387 }
 0x13d   :  { %v3638_v49 = vpop.f32.mrf.mxu0  ;;  %v3640_v6 = vpop.f32.mrf.mxu1 }
 0x13f   :  { %v1004_v38 = vpop.f32.mrf.mxu0  ;;  %v1132_v39 = vpop.f32.mrf.mxu1 }
 0x140   :  { %v3706_v39 = vpop.permute.xlu1 %1392 }
 0x141   :  { %v3644_v18 = vpop.f32.mrf.mxu0  ;;  %v3646_v19 = vpop.f32.mrf.mxu1 }
 0x142   :  { %v2585_v51 = vpack.c.bf16 %v3644_v18, %v3638_v49  ;;  %v2665_v29 = vpack.c.bf16 %v3646_v19, %v3640_v6 }
 0x143   :  { %v1007_v30 = vpop.f32.mrf.mxu0  ;;  %v1135_v31 = vpop.f32.mrf.mxu1 }
 0x144   :  { %2733 = vst [vmem:[#allocation7 + $0x10] sm:$0xff] %v2585_v51   ;;  %2749 = vst [vmem:[#allocation7 + $0x90] sm:$0xff] %v2665_v29  }
 0x145   :  { %v3656_v21 = vpop.f32.mrf.mxu0  ;;  %v3658_v52 = vpop.f32.mrf.mxu1 }
 0x147   :  { %v1012_v53 = vpop.f32.mrf.mxu0  ;;  %v1140_v60 = vpop.f32.mrf.mxu1 }
 0x148   :  { %v3712_v53 = vpop.permute.xlu0 %1397 }
 0x149   :  { %v3662_v23 = vpop.f32.mrf.mxu0  ;;  %v3664_v54 = vpop.f32.mrf.mxu1 }
 0x14a   :  { %v2590_v24 = vpack.c.bf16 %v3662_v23, %v3656_v21  ;;  %v2670_v25 = vpack.c.bf16 %v3664_v54, %v3658_v52 }
 0x14b   :  { %v1015_v8 = vpop.f32.mrf.mxu0  ;;  %v1143_v56 = vpop.f32.mrf.mxu1 }
 0x14c   :  { %2734 = vst [vmem:[#allocation7 + $0x18] sm:$0xff] %v2590_v24   ;;  %2750 = vst [vmem:[#allocation7 + $0x98] sm:$0xff] %v2670_v25   ;;  %v3718_v25 = vpop.permute.xlu1 %1402 }
 0x14d   :  { %v3672_v57 = vpop.f32.mrf.mxu0  ;;  %v3674_v9 = vpop.f32.mrf.mxu1 }
 0x14f   :  { %v1020_v41 = vpop.f32.mrf.mxu0  ;;  %v1148_v26 = vpop.f32.mrf.mxu1 }
 0x151   :  { %v3680_v2 = vpop.f32.mrf.mxu0  ;;  %v3682_v58 = vpop.f32.mrf.mxu1 }
 0x152   :  { %v2595_v59 = vpack.c.bf16 %v3680_v2, %v3672_v57  ;;  %v2675_v3 = vpack.c.bf16 %v3682_v58, %v3674_v9 }
 0x153   :  { %v1023_v34 = vpop.f32.mrf.mxu0  ;;  %v1151_v35 = vpop.f32.mrf.mxu1 }
 0x154   :  { %2735 = vst [vmem:[#allocation7 + $0x20] sm:$0xff] %v2595_v59   ;;  %2751 = vst [vmem:[#allocation7 + $0xa0] sm:$0xff] %v2675_v3   ;;  %v3728_v34 = vpop.permute.xlu0 %1407 }
 0x155   :  { %v3690_v63 = vpop.f32.mrf.mxu0  ;;  %v3692_v44 = vpop.f32.mrf.mxu1 }
 0x156   :  { %4060 = vst [vmem:[#allocation17_spill] sm:$0xff] %v3692_v44 }
 0x157   :  { %v1028_v4 = vpop.f32.mrf.mxu0  ;;  %v1156_v5 = vpop.f32.mrf.mxu1 }
 0x158   :  { %v3730_v5 = vpop.permute.xlu1 %1412 }
 0x159   :  { %v3696_v15 = vpop.f32.mrf.mxu0  ;;  %v3698_v46 = vpop.f32.mrf.mxu1 }
 0x15a   :  { %4061 = vst [vmem:[#allocation16_spill] sm:$0xff] %v3698_v46  ;;  %v2600_v61 = vpack.c.bf16 %v3696_v15, %v3690_v63  ;;  %v2680_v16 = vpack.c.bf16 %v3698_v46, %v3692_v44 }
 0x15b   :  { %v1031_v17 = vpop.f32.mrf.mxu0  ;;  %v1159_v38 = vpop.f32.mrf.mxu1 }
 0x15c   :  { %2736 = vst [vmem:[#allocation7 + $0x28] sm:$0xff] %v2600_v61   ;;  %2752 = vst [vmem:[#allocation7 + $0xa8] sm:$0xff] %v2680_v16   ;;  %v1626_v61 = vmul.f32 %v3608_v28, %v3610_v0 }
 0x15d   :  { %v3708_v51 = vpop.f32.mrf.mxu0  ;;  %v3710_v29 = vpop.f32.mrf.mxu1 }
 0x15e   :  { %4062 = vst [vmem:[#allocation21_spill] sm:$0xff] %v3710_v29  ;;  %v1763_v28 = vmul.f32 %v1626_v61, %v3610_v0 }
 0x15f   :  { %v1036_v30 = vpop.f32.mrf.mxu0  ;;  %v1164_v31 = vpop.f32.mrf.mxu1 }
 0x160   :  { %v1625_v30 = vmul.f32 %v3600_v10, %v3604_v42  ;;  %v1627_v31 = vmul.f32 %v3602_v11, %v3620_v36 }
 0x161   :  { %v3714_v60 = vpop.f32.mrf.mxu0  ;;  %v3716_v24 = vpop.f32.mrf.mxu1 }
 0x162   :  { %4063 = vst [vmem:[#allocation20_spill] sm:$0xff] %v3716_v24  ;;  %v2605_v8 = vpack.c.bf16 %v3714_v60, %v3708_v51  ;;  %v2685_v56 = vpack.c.bf16 %v3716_v24, %v3710_v29  ;;  %v3755_v24 = vpop.permute.xlu1 %1422  ;;  %v1762_v11 = vmul.f32 %v1625_v30, %v3604_v42  ;;  %v1690_v0 = vadd.f32 %v1626_v61, %v1625_v30 }
 0x163   :  { %v1039_v41 = vpop.f32.mrf.mxu0  ;;  %v1167_v26 = vpop.f32.mrf.mxu1  ;;  %v1631_v61 = vmul.f32 %v3636_v48, %v3656_v21 }
 0x164   :  { %2737 = vst [vmem:[#allocation7 + $0x30] sm:$0xff] %v2605_v8   ;;  %2753 = vst [vmem:[#allocation7 + $0xb0] sm:$0xff] %v2685_v56   ;;  %v3746_v26 = vpop.permute.xlu0 %1417  ;;  %v1691_v42 = vadd.f32 %v1690_v0, %v1627_v31 }
 0x165   :  { %v3724_v59 = vpop.f32.mrf.mxu0  ;;  %v3726_v3 = vpop.f32.mrf.mxu1 }
 0x166   :  { %4064 = vst [vmem:[#allocation19_spill] sm:$0xff] %v3726_v3 }
 0x167   :  { %v1044_v35 = vpop.f32.mrf.mxu0  ;;  %v1172_v4 = vpop.f32.mrf.mxu1 }
 0x168   :  { %v1628_v35 = vmul.f32 %v3614_v13, %v3628_v1  ;;  %v3768_v44 = vpop.permute.xlu0 %1427 }
 0x169   :  { %v3734_v16 = vpop.f32.mrf.mxu0  ;;  %v3736_v17 = vpop.f32.mrf.mxu1 }
 0x16a   :  { %4065 = vst [vmem:[#allocation18_spill] sm:$0xff] %v3736_v17  ;;  %v2610_v38 = vpack.c.bf16 %v3734_v16, %v3724_v59  ;;  %v2690_v8 = vpack.c.bf16 %v3736_v17, %v3726_v3  ;;  %v1826_v3 = vadd.f32 %v1763_v28, %v1762_v11  ;;  %v1765_v13 = vmul.f32 %v1628_v35, %v3628_v1  ;;  %v3777_v28 = vpop.permute.xlu1 %1432 }
 0x16b   :  { %v1047_v56 = vpop.f32.mrf.mxu0  ;;  %v1175_v41 = vpop.f32.mrf.mxu1  ;;  %v1692_v11 = vadd.f32 %v1691_v42, %v1628_v35 }
 0x16c   :  { %2738 = vst [vmem:[#allocation7 + $0x38] sm:$0xff] %v2610_v38   ;;  %2754 = vst [vmem:[#allocation7 + $0xb8] sm:$0xff] %v2690_v8   ;;  %v1764_v56 = vmul.f32 %v1627_v31, %v3620_v36  ;;  %v1629_v41 = vmul.f32 %v3624_v14, %v3638_v49  ;;  %v1630_v8 = vmul.f32 %v3626_v47, %v3644_v18 }
 0x16d   :  { %v3751_v4 = vpop.f32.mrf.mxu0  ;;  %v3753_v10 = vpop.f32.mrf.mxu1 }
 0x16e   :  { %v1827_v14 = vadd.f32 %v1826_v3, %v1764_v56  ;;  %v1767_v31 = vmul.f32 %v1630_v8, %v3644_v18  ;;  %v1632_v3 = vmul.f32 %v3642_v7, %v3662_v23  ;;  %v1693_v48 = vadd.f32 %v1692_v11, %v1629_v41 }
 0x16f   :  { %v1052_v38 = vpop.f32.mrf.mxu0  ;;  %v1180_v17 = vpop.f32.mrf.mxu1 }
 0x170   :  { %v1766_v17 = vmul.f32 %v1629_v41, %v3638_v49  ;;  %v1828_v38 = vadd.f32 %v1827_v14, %v1765_v13  ;;  %v3789_v13 = vpop.permute.xlu0 %1437  ;;  %v1694_v18 = vadd.f32 %v1693_v48, %v1630_v8  ;;  %v1769_v7 = vmul.f32 %v1632_v3, %v3662_v23 }
 0x171   :  { %v3764_v29 = vpop.f32.mrf.mxu0  ;;  %v3766_v46 = vpop.f32.mrf.mxu1  ;;  %v1634_v14 = vmul.f32 %v3654_v20, %v3680_v2  ;;  %v1635_v8 = vmul.f32 %v3660_v22, %v3690_v63 }
 0x172   :  { %v2615_v36 = vpack.c.bf16 %v3764_v29, %v3751_v4  ;;  %v2695_v1 = vpack.c.bf16 %v3766_v46, %v3753_v10  ;;  %v1829_v0 = vadd.f32 %v1828_v38, %v1766_v17  ;;  %v3798_v17 = vpop.permute.xlu1 %1442 }
 0x173   :  { %v1055_v47 = vpop.f32.mrf.mxu0  ;;  %v1183_v30 = vpop.f32.mrf.mxu1 }
 0x174   :  { %2739 = vst [vmem:[#allocation7 + $0x40] sm:$0xff] %v2615_v36   ;;  %2755 = vst [vmem:[#allocation7 + $0xc0] sm:$0xff] %v2695_v1   ;;  %v1768_v47 = vmul.f32 %v1631_v61, %v3656_v21  ;;  %v1633_v30 = vmul.f32 %v3648_v50, %v3672_v57  ;;  %v1830_v36 = vadd.f32 %v1829_v0, %v1767_v31 }
 0x175   :  { %v3782_v49 = vpop.f32.mrf.mxu0  ;;  %v3784_v56 = vpop.f32.mrf.mxu1  ;;  %v1695_v21 = vadd.f32 %v1694_v18, %v1631_v61  ;;  %v1636_v61 = vmul.f32 %v3666_v55, %v3696_v15 }
 0x176   :  { %v1831_v11 = vadd.f32 %v1830_v36, %v1768_v47  ;;  %v1770_v38 = vmul.f32 %v1633_v30, %v3672_v57  ;;  %v1772_v36 = vmul.f32 %v1635_v8, %v3690_v63 }
 0x177   :  { %v1060_v35 = vpop.f32.mrf.mxu0  ;;  %v1188_v42 = vpop.f32.mrf.mxu1  ;;  %v1696_v48 = vadd.f32 %v1695_v21, %v1632_v3  ;;  %v1637_v3 = vmul.f32 %v3676_v40, %v3708_v51 }
 0x178   :  { %v1832_v0 = vadd.f32 %v1831_v11, %v1769_v7  ;;  %v1771_v35 = vmul.f32 %v1634_v14, %v3680_v2  ;;  %v3814_v42 = vpop.permute.xlu0 %1447  ;;  %v3819_v2 = vpop.permute.xlu1 %1452  ;;  %v1773_v11 = vmul.f32 %v1636_v61, %v3696_v15 }
 0x179   :  { %v3794_v1 = vpop.f32.mrf.mxu0  ;;  %v3796_v41 = vpop.f32.mrf.mxu1  ;;  %v1697_v22 = vadd.f32 %v1696_v48, %v1633_v30 }
 0x17a   :  { %v2620_v50 = vpack.c.bf16 %v3794_v1, %v3782_v49  ;;  %v2700_v23 = vpack.c.bf16 %v3796_v41, %v3784_v56  ;;  %v1833_v18 = vadd.f32 %v1832_v0, %v1770_v38 }
 0x17b   :  { %v1063_v20 = vpop.f32.mrf.mxu0  ;;  %v1191_v31 = vpop.f32.mrf.mxu1 }
 0x17c   :  { %2740 = vst [vmem:[#allocation7 + $0x48] sm:$0xff] %v2620_v50   ;;  %2756 = vst [vmem:[#allocation7 + $0xc8] sm:$0xff] %v2700_v23   ;;  %v1698_v50 = vadd.f32 %v1697_v22, %v1634_v14  ;;  %v1834_v55 = vadd.f32 %v1833_v18, %v1771_v35  ;;  %v1638_v23 = vmul.f32 %v3678_v27, %v3714_v60  ;;  %v3835_v27 = vpop.permute.xlu0 %1457 }
 0x17d   :  { %v3810_v47 = vpop.f32.mrf.mxu0  ;;  %v3812_v57 = vpop.f32.mrf.mxu1  ;;  %v1774_v31 = vmul.f32 %v1637_v3, %v3708_v51  ;;  %v1639_v14 = vmul.f32 %v3688_v62, %v3724_v59  ;;  %v1640_v18 = vmul.f32 %v3694_v45, %v3734_v16 }
 0x17e   :  { %v1699_v38 = vadd.f32 %v1698_v50, %v1635_v8  ;;  %v1835_v40 = vadd.f32 %v1834_v55, %v1772_v36  ;;  %v1775_v8 = vmul.f32 %v1638_v23, %v3714_v60  ;;  %v3844_v62 = vpop.permute.xlu1 %1462 }
 0x17f   :  { %v1068_v7 = vpop.f32.mrf.mxu0  ;;  %v1196_v21 = vpop.f32.mrf.mxu1  ;;  %v1776_v50 = vmul.f32 %v1639_v14, %v3724_v59  ;;  %v1777_v45 = vmul.f32 %v1640_v18, %v3734_v16 }
 0x180   :  { %v1700_v35 = vadd.f32 %v1699_v38, %v1636_v61  ;;  %v1836_v22 = vadd.f32 %v1835_v40, %v1773_v11  ;;  %v1641_v61 = vmul.f32 %v3700_v33, %v3751_v4 }
 0x181   :  { %v3824_v20 = vpop.f32.mrf.mxu0  ;;  %v3826_v30 = vpop.f32.mrf.mxu1 }
 0x182   :  { %v2625_v63 = vpack.c.bf16 %v3824_v20, %v3810_v47  ;;  %v2705_v15 = vpack.c.bf16 %v3826_v30, %v3812_v57  ;;  %v1701_v7 = vadd.f32 %v1700_v35, %v1637_v3  ;;  %v1837_v21 = vadd.f32 %v1836_v22, %v1774_v31 }
 0x183   :  { %v1071_v48 = vpop.f32.mrf.mxu0  ;;  %v1199_v0 = vpop.f32.mrf.mxu1  ;;  %v1778_v33 = vmul.f32 %v1641_v61, %v3751_v4 }
 0x184   :  { %2741 = vst [vmem:[#allocation7 + $0x50] sm:$0xff] %v2625_v63   ;;  %2757 = vst [vmem:[#allocation7 + $0xd0] sm:$0xff] %v2705_v15   ;;  %v1702_v60 = vadd.f32 %v1701_v7, %v1638_v23  ;;  %v1838_v38 = vadd.f32 %v1837_v21, %v1775_v8  ;;  %v1642_v63 = vmul.f32 %v3706_v39, %v3764_v29  ;;  %v3854_v48 = vpop.permute.xlu0 %1467  ;;  %v3862_v39 = vpop.permute.xlu1 %1472 }
 0x185   :  { %v3840_v51 = vpop.f32.mrf.mxu0  ;;  %v3842_v36 = vpop.f32.mrf.mxu1  ;;  %v1643_v23 = vmul.f32 %v3712_v53, %v3782_v49  ;;  %v1644_v7 = vmul.f32 %v3718_v25, %v3794_v1  ;;  %v1646_v25 = vmul.f32 %v3730_v5, %v3824_v20 }
 0x186   :  { %v1703_v3 = vadd.f32 %v1702_v60, %v1639_v14  ;;  %v1839_v31 = vadd.f32 %v1838_v38, %v1776_v50  ;;  %v1779_v14 = vmul.f32 %v1642_v63, %v3764_v29 }
 0x187   :  { %v1076_v55 = vpop.f32.mrf.mxu0  ;;  %v1204_v11 = vpop.f32.mrf.mxu1 }
 0x188   :  { %v1704_v22 = vadd.f32 %v1703_v3, %v1640_v18  ;;  %v1840_v8 = vadd.f32 %v1839_v31, %v1777_v45  ;;  %v1780_v55 = vmul.f32 %v1643_v23, %v3782_v49  ;;  %v1645_v11 = vmul.f32 %v3728_v34, %v3810_v47  ;;  %v3872_v38 = vpop.permute.xlu0 %1477 }
 0x189   :  { %v1077_v40 = vpop.f32.mrf.mxu0  ;;  %v3852_v15 = vpop.f32.mrf.mxu1  ;;  %v1781_v3 = vmul.f32 %v1644_v7, %v3794_v1 }
 0x18a   :  { %v2630_v59 = vpack.c.bf16 %v1077_v40, %v3840_v51  ;;  %v2710_v16 = vpack.c.bf16 %v3852_v15, %v3842_v36  ;;  %v1705_v53 = vadd.f32 %v1704_v22, %v1641_v61  ;;  %v1841_v50 = vadd.f32 %v1840_v8, %v1778_v33  ;;  %v3879_v61 = vpop.permute.xlu1 %1482 }
 0x18b   :  { %v1079_v0 = vpop.f32.mrf.mxu0  ;;  %v1207_v35 = vpop.f32.mrf.mxu1  ;;  %v1782_v34 = vmul.f32 %v1645_v11, %v3810_v47  ;;  %v1783_v8 = vmul.f32 %v1646_v25, %v3824_v20 }
 0x18c   :  { %2742 = vst [vmem:[#allocation7 + $0x58] sm:$0xff] %v2630_v59   ;;  %2758 = vst [vmem:[#allocation7 + $0xd8] sm:$0xff] %v2710_v16   ;;  %v1706_v45 = vadd.f32 %v1705_v53, %v1642_v63  ;;  %v1842_v29 = vadd.f32 %v1841_v50, %v1779_v14  ;;  %v1647_v0 = vmul.f32 %v3746_v26, %v3840_v51  ;;  %v3890_v47 = vpop.permute.xlu0 %1487 }
 0x18d   :  { %v1082_v4 = vpop.f32.mrf.mxu0  ;;  %v3867_v21 = vpop.f32.mrf.mxu1  ;;  %v1648_v14 = vmul.f32 %v3755_v24, %v1077_v40 }
 0x18e   :  { %v1707_v49 = vadd.f32 %v1706_v45, %v1643_v23  ;;  %v1843_v16 = vadd.f32 %v1842_v29, %v1780_v55  ;;  %v1784_v55 = vmul.f32 %v1647_v0, %v3840_v51  ;;  %v3894_v45 = vpop.permute.xlu1 %1492 }
 0x18f   :  { %v1084_v60 = vpop.f32.mrf.mxu0  ;;  %v1212_v18 = vpop.f32.mrf.mxu1 }
 0x190   :  { %v1708_v22 = vadd.f32 %v1707_v49, %v1644_v7  ;;  %v1844_v5 = vadd.f32 %v1843_v16, %v1781_v3  ;;  %v1649_v60 = vmul.f32 %v3768_v44, %v1082_v4  ;;  %v1785_v3 = vmul.f32 %v1648_v14, %v1077_v40 }
 0x191   :  { %v1085_v59 = vpop.f32.mrf.mxu0  ;;  %v3877_v31 = vpop.f32.mrf.mxu1 }
 0x192   :  { %v2635_v33 = vpack.c.bf16 %v1085_v59, %v1082_v4  ;;  %v2715_v63 = vpack.c.bf16 %v3877_v31, %v3867_v21  ;;  %v1709_v50 = vadd.f32 %v1708_v22, %v1645_v11  ;;  %v1845_v26 = vadd.f32 %v1844_v5, %v1782_v34 }
 0x193   :  { %v1087_v1 = vpop.f32.mrf.mxu0  ;;  %v1215_v35 = vpop.f32.mrf.mxu1  ;;  %v1650_v24 = vmul.f32 %v3777_v28, %v1085_v59  ;;  %v1786_v34 = vmul.f32 %v1649_v60, %v1082_v4 }
 0x194   :  { %2743 = vst [vmem:[#allocation7 + $0x60] sm:$0xff] %v2635_v33   ;;  %2759 = vst [vmem:[#allocation7 + $0xe0] sm:$0xff] %v2715_v63   ;;  %v1710_v29 = vadd.f32 %v1709_v50, %v1646_v25  ;;  %v1846_v20 = vadd.f32 %v1845_v26, %v1783_v8  ;;  %v3901_v35 = vpop.permute.xlu0 %1497 }
 0x195   :  { %v1090_v23 = vpop.f32.mrf.mxu0  ;;  %v3888_v53 = vpop.f32.mrf.mxu1  ;;  %v1787_v28 = vmul.f32 %v1650_v24, %v1085_v59 }
 0x196   :  { %v1711_v16 = vadd.f32 %v1710_v29, %v1647_v0  ;;  %v1847_v11 = vadd.f32 %v1846_v20, %v1784_v55  ;;  %v1651_v25 = vmul.f32 %v3789_v13, %v1090_v23  ;;  %v3906_v0 = vpop.permute.xlu1 %1502 }
 0x197   :  { %v1092_v18 = vpop.f32.mrf.mxu0  ;;  %v1220_v7 = vpop.f32.mrf.mxu1 }
 0x198   :  { %v1712_v22 = vadd.f32 %v1711_v16, %v1648_v14  ;;  %v1848_v40 = vadd.f32 %v1847_v11, %v1785_v3  ;;  %v1788_v29 = vmul.f32 %v1651_v25, %v1090_v23  ;;  %v3912_v59 = vpop.permute.xlu0 %1507 }
 0x199   :  { %v1093_v49 = vpop.f32.mrf.mxu0  ;;  %v3897_v33 = vpop.f32.mrf.mxu1 }
 0x19a   :  { %v2640_v63 = vpack.c.bf16 %v1093_v49, %v1090_v23  ;;  %v2720_v51 = vpack.c.bf16 %v3897_v33, %v3888_v53  ;;  %v1713_v4 = vadd.f32 %v1712_v22, %v1649_v60  ;;  %v1652_v50 = vmul.f32 %v3798_v17, %v1093_v49 }
 0x19b   :  { %v1095_v44 = vpop.f32.mrf.mxu0  ;;  %v1223_v1 = vpop.f32.mrf.mxu1  ;;  %v1849_v26 = vadd.f32 %v1848_v40, %v1786_v34 }
 0x19c   :  { %2744 = vst [vmem:[#allocation7 + $0x68] sm:$0xff] %v2640_v63   ;;  %2760 = vst [vmem:[#allocation7 + $0xe8] sm:$0xff] %v2720_v51   ;;  %v1714_v7 = vadd.f32 %v1713_v4, %v1650_v24  ;;  %v1789_v63 = vmul.f32 %v1652_v50, %v1093_v49  ;;  %v3917_v24 = vpop.permute.xlu1 %1512 }
 0x19d   :  { %v1098_v5 = vpop.f32.mrf.mxu0  ;;  %v3904_v8 = vpop.f32.mrf.mxu1  ;;  %v1850_v13 = vadd.f32 %v1849_v26, %v1787_v28 }
 0x19e   :  { %v1653_v14 = vmul.f32 %v3814_v42, %v1098_v5  ;;  %v1715_v16 = vadd.f32 %v1714_v7, %v1651_v25  ;;  %v3922_v26 = vpop.permute.xlu0 %1517 }
 0x19f   :  { %v1100_v55 = vpop.f32.mrf.mxu0  ;;  %v1228_v18 = vpop.f32.mrf.mxu1  ;;  %v1851_v23 = vadd.f32 %v1850_v13, %v1788_v29 }
 0x1a0   :  { %v1716_v42 = vadd.f32 %v1715_v16, %v1652_v50  ;;  %v1790_v44 = vmul.f32 %v1653_v14, %v1098_v5  ;;  %v3928_v13 = vpop.permute.xlu1 %1522 }
 0x1a1   :  { %v1101_v20 = vpop.f32.mrf.mxu0  ;;  %v3910_v3 = vpop.f32.mrf.mxu1  ;;  %v1852_v25 = vadd.f32 %v1851_v23, %v1789_v63 }
 0x1a2   :  { %v1654_v11 = vmul.f32 %v3819_v2, %v1101_v20  ;;  %v2645_v60 = vpack.c.bf16 %v1101_v20, %v1098_v5  ;;  %v2725_v17 = vpack.c.bf16 %v3910_v3, %v3904_v8  ;;  %v1717_v49 = vadd.f32 %v1716_v42, %v1653_v14 }
 0x1a3   :  { %v1103_v34 = vpop.f32.mrf.mxu0  ;;  %v1231_v51 = vpop.f32.mrf.mxu1  ;;  %v1853_v55 = vadd.f32 %v1852_v25, %v1790_v44  ;;  %v1657_v5 = vmul.f32 %v3854_v48, %v3606_v43 }
 0x1a4   :  { %2745 = vst [vmem:[#allocation7 + $0x70] sm:$0xff] %v2645_v60   ;;  %2761 = vst [vmem:[#allocation7 + $0xf0] sm:$0xff] %v2725_v17   ;;  %v1791_v40 = vmul.f32 %v1654_v11, %v1101_v20  ;;  %v1718_v18 = vadd.f32 %v1717_v49, %v1654_v11  ;;  %v1658_v17 = vmul.f32 %v3862_v39, %v3612_v12 }
 0x1a5   :  { %v1106_v1 = vpop.f32.mrf.mxu0  ;;  %v3919_v22 = vpop.f32.mrf.mxu1  ;;  %v1794_v23 = vmul.f32 %v1657_v5, %v3606_v43 }
 0x1a6   :  { %v1655_v2 = vmul.f32 %v3835_v27, %v1106_v1  ;;  %v1854_v14 = vadd.f32 %v1853_v55, %v1791_v40 }
 0x1a7   :  { %v1108_v28 = vpop.f32.mrf.mxu0  ;;  %v1236_v4 = vpop.f32.mrf.mxu1 }
 0x1a8   :  { %v1792_v7 = vmul.f32 %v1655_v2, %v1106_v1  ;;  %v1719_v20 = vadd.f32 %v1718_v18, %v1655_v2 }
 0x1a9   :  { %v1109_v50 = vpop.f32.mrf.mxu0  ;;  %v3926_v29 = vpop.f32.mrf.mxu1 }
 0x1aa   :  { %v1656_v27 = vmul.f32 %v3844_v62, %v1109_v50  ;;  %v2650_v16 = vpack.c.bf16 %v1109_v50, %v1106_v1  ;;  %v2730_v63 = vpack.c.bf16 %v3926_v29, %v3919_v22  ;;  %v1855_v48 = vadd.f32 %v1854_v14, %v1792_v7 }
 0x1ab   :  { %v1111_v11 = vpop.f32.mrf.mxu0  ;;  %v1239_v60 = vpop.f32.mrf.mxu1  ;;  %v1659_v62 = vmul.f32 %v3872_v38, %v3622_v37 }
 0x1ac   :  { %v1720_v34 = vadd.f32 %v1719_v20, %v1656_v27  ;;  %v1793_v51 = vmul.f32 %v1656_v27, %v1109_v50  ;;  %2746 = vst [vmem:[#allocation7 + $0x78] sm:$0xff] %v2650_v16   ;;  %2762 = vst [vmem:[#allocation7 + $0xf8] sm:$0xff] %v2730_v63  }
 0x1ae   :  { %v1721_v42 = vadd.f32 %v1720_v34, %v1657_v5  ;;  %v1856_v44 = vadd.f32 %v1855_v48, %v1793_v51 }
 0x1af   :  { %2851 = shalt.err (!%p2848_p9)
}
 0x1b0   :  { %2232 = dma.vmem_to_hbm [thread:$0]  %s2227_s23, 4096, %s4019_s3, [#allocation6], %s2889_s18, %s2889_s18, %s2890_s19   ;;  %v1528_v43 = vpop.permute.xlu0 %1527  ;;  %v1795_v39 = vmul.f32 %v1658_v17, %v3612_v12  ;;  %v1660_v38 = vmul.f32 %v3879_v61, %v3630_v32  ;;  %v1722_v1 = vadd.f32 %v1721_v42, %v1658_v17  ;;  %v1857_v25 = vadd.f32 %v1856_v44, %v1794_v23  ;;  %v1533_v49 = vpop.permute.xlu1 %1532  ;;  %v4066_v51 = vld [vmem:[#allocation17_spill] sm:$0xff]  ;;  %v4067_v42 = vld [vmem:[#allocation16_spill] sm:$0xff] }
 0x1b1   :  { %v1796_v40 = vmul.f32 %v1659_v62, %v3622_v37  ;;  %v1661_v2 = vmul.f32 %v3890_v47, %v3640_v6  ;;  %v1662_v18 = vmul.f32 %v3894_v45, %v3646_v19  ;;  %v1663_v50 = vmul.f32 %v3901_v35, %v3658_v52  ;;  %s2894_s3 = smov [#allocation8]  }
 0x1b2   :  { %v1723_v28 = vadd.f32 %v1722_v1, %v1659_v62  ;;  %v1858_v4 = vadd.f32 %v1857_v25, %v1795_v39  ;;  %v1797_v55 = vmul.f32 %v1660_v38, %v3630_v32  ;;  %v1664_v27 = vmul.f32 %v3906_v0, %v3664_v54  ;;  %v4068_v1 = vld [vmem:[#allocation21_spill] sm:$0xff]  ;;  %s2239_s18 = sshll.u32 %s2894_s3, 4  ;;  %s2240_s18 = int_to_ptr.vmem [resolvable:$true] %s2239_s18 }
 0x1b3   :  { %v1798_v61 = vmul.f32 %v1661_v2, %v3640_v6  ;;  %v1799_v47 = vmul.f32 %v1662_v18, %v3646_v19  ;;  %v1800_v45 = vmul.f32 %v1663_v50, %v3658_v52  ;;  %v1665_v63 = vmul.f32 %v3912_v59, %v3674_v9  ;;  %s2860_s19 = scalar_lea.vmem %s2240_s18, 128  ;;  %p2865_p11 = scmp.lt.s32.totalorder %s2240_s18, %s2240_s18 }
 0x1b4   :  { %v1724_v7 = vadd.f32 %v1723_v28, %v1660_v38  ;;  %v1859_v12 = vadd.f32 %v1858_v4, %v1796_v40  ;;  %v1538_v5 = vpop.permute.xlu0 %1537  ;;  %v1543_v20 = vpop.permute.xlu1 %1542  ;;  %v1801_v35 = vmul.f32 %v1664_v27, %v3664_v54  ;;  %v1666_v17 = vmul.f32 %v3917_v24, %v3682_v58  ;;  %p2861_p10 = scmp.ne.s32.totalorder %s2240_s18, %s2860_s19  ;;  %p2866_p12 = scmp.lt.s32.totalorder %s2860_s19, %s2860_s19 }
 0x1b5   :  { %v1802_v0 = vmul.f32 %v1665_v63, %v3674_v9  ;;  %v1667_v23 = vmul.f32 %v3922_v26, %v4066_v51  ;;  %v1668_v44 = vmul.f32 %v3928_v13, %v4067_v42  ;;  %v1669_v25 = vmul.f32 %v1528_v43, %v4068_v1  ;;  %v4069_v26 = vld [vmem:[#allocation20_spill] sm:$0xff] }
 0x1b6   :  { %v1725_v14 = vadd.f32 %v1724_v7, %v1661_v2  ;;  %v1860_v37 = vadd.f32 %v1859_v12, %v1797_v55  ;;  %v1803_v59 = vmul.f32 %v1666_v17, %v3682_v58  ;;  %v1670_v4 = vmul.f32 %v1533_v49, %v4069_v26  ;;  %v4070_v7 = vld [vmem:[#allocation19_spill] sm:$0xff]  ;;  %p2867_p13 = por %p2866_p12, %p2865_p11 }
 0x1b7   :  { %v1804_v24 = vmul.f32 %v1667_v23, %v4066_v51  ;;  %v1805_v28 = vmul.f32 %v1668_v44, %v4067_v42  ;;  %v1806_v58 = vmul.f32 %v1669_v25, %v4068_v1  ;;  %v1671_v13 = vmul.f32 %v1538_v5, %v4070_v7 }
 0x1b8   :  { %v1726_v32 = vadd.f32 %v1725_v14, %v1662_v18  ;;  %v1861_v16 = vadd.f32 %v1860_v37, %v1798_v61  ;;  %v1548_v60 = vpop.permute.xlu0 %1547  ;;  %v1553_v34 = vpop.permute.xlu1 %1552  ;;  %v1807_v14 = vmul.f32 %v1670_v4, %v4069_v26  ;;  %v4071_v37 = vld [vmem:[#allocation18_spill] sm:$0xff]  ;;  %p2868_p0 = pnand %p2867_p13, %p2861_p10 }
 0x1b9   :  { %v1672_v43 = vmul.f32 %v1543_v20, %v4071_v37  ;;  %v1673_v49 = vmul.f32 %v1548_v60, %v3753_v10  ;;  %v1674_v5 = vmul.f32 %v1553_v34, %v3766_v46 }
 0x1ba   :  { %v1727_v11 = vadd.f32 %v1726_v32, %v1663_v50  ;;  %v1862_v6 = vadd.f32 %v1861_v16, %v1799_v47  ;;  %v1808_v16 = vmul.f32 %v1671_v13, %v4070_v7 }
 0x1bc   :  { %v1728_v48 = vadd.f32 %v1727_v11, %v1664_v27  ;;  %v1863_v19 = vadd.f32 %v1862_v6, %v1800_v45  ;;  %v1558_v38 = vpop.permute.xlu0 %1557  ;;  %v1563_v9 = vpop.permute.xlu1 %1562  ;;  %v1809_v11 = vmul.f32 %v1672_v43, %v4071_v37 }
 0x1bd   :  { %v1675_v20 = vmul.f32 %v1558_v38, %v3784_v56  ;;  %v1676_v60 = vmul.f32 %v1563_v9, %v3796_v41 }
 0x1be   :  { %v1729_v52 = vadd.f32 %v1728_v48, %v1665_v63  ;;  %v1864_v62 = vadd.f32 %v1863_v19, %v1801_v35  ;;  %v1810_v48 = vmul.f32 %v1673_v49, %v3753_v10 }
 0x1bf   :  { %v1813_v10 = vmul.f32 %v1676_v60, %v3796_v41 }
 0x1c0   :  { %v1730_v39 = vadd.f32 %v1729_v52, %v1666_v17  ;;  %v1865_v54 = vadd.f32 %v1864_v62, %v1802_v0  ;;  %v1568_v50 = vpop.permute.xlu0 %1567  ;;  %v1573_v32 = vpop.permute.xlu1 %1572 }
 0x1c1   :  { %v1677_v34 = vmul.f32 %v1568_v50, %v3812_v57 }
 0x1c2   :  { %v1731_v40 = vadd.f32 %v1730_v39, %v1667_v23  ;;  %v1866_v2 = vadd.f32 %v1865_v54, %v1803_v59  ;;  %v1811_v23 = vmul.f32 %v1674_v5, %v3766_v46  ;;  %v1812_v59 = vmul.f32 %v1675_v20, %v3784_v56 }
 0x1c3   :  { %v1678_v54 = vmul.f32 %v1573_v32, %v3826_v30  ;;  %v1814_v46 = vmul.f32 %v1677_v34, %v3812_v57 }
 0x1c4   :  { %v1732_v55 = vadd.f32 %v1731_v40, %v1668_v44  ;;  %v1867_v18 = vadd.f32 %v1866_v2, %v1804_v24  ;;  %v1578_v17 = vpop.permute.xlu0 %1577  ;;  %v1583_v51 = vpop.permute.xlu1 %1582 }
 0x1c5   :  { %v1815_v56 = vmul.f32 %v1678_v54, %v3826_v30  ;;  %v1680_v9 = vmul.f32 %v1583_v51, %v3852_v15 }
 0x1c6   :  { %v1733_v12 = vadd.f32 %v1732_v55, %v1669_v25  ;;  %v1868_v61 = vadd.f32 %v1867_v18, %v1805_v28  ;;  %v1679_v25 = vmul.f32 %v1578_v17, %v3842_v36 }
 0x1c7   :  { %v1817_v57 = vmul.f32 %v1680_v9, %v3852_v15 }
 0x1c8   :  { %v1734_v47 = vadd.f32 %v1733_v12, %v1670_v4  ;;  %v1869_v27 = vadd.f32 %v1868_v61, %v1806_v58  ;;  %v1588_v39 = vpop.permute.xlu0 %1587  ;;  %v1593_v1 = vpop.permute.xlu1 %1592  ;;  %v1816_v41 = vmul.f32 %v1679_v25, %v3842_v36 }
 0x1c9   :  { %v1681_v55 = vmul.f32 %v1588_v39, %v3867_v21 }
 0x1ca   :  { %v1735_v45 = vadd.f32 %v1734_v47, %v1671_v13  ;;  %v1870_v63 = vadd.f32 %v1869_v27, %v1807_v14  ;;  %v1682_v13 = vmul.f32 %v1593_v1, %v3877_v31 }
 0x1cb   :  { %v1818_v30 = vmul.f32 %v1681_v55, %v3867_v21 }
 0x1cc   :  { %v1871_v6 = vadd.f32 %v1870_v63, %v1808_v16  ;;  %v1736_v35 = vadd.f32 %v1735_v45, %v1672_v43  ;;  %v1598_v4 = vpop.permute.xlu0 %1597  ;;  %v1603_v7 = vpop.permute.xlu1 %1602  ;;  %v1819_v36 = vmul.f32 %v1682_v13, %v3877_v31 }
 0x1cd   :  { %v1683_v50 = vmul.f32 %v1598_v4, %v3888_v53  ;;  %v1684_v47 = vmul.f32 %v1603_v7, %v3897_v33 }
 0x1ce   :  { %v1737_v19 = vadd.f32 %v1736_v35, %v1673_v49  ;;  %v1872_v0 = vadd.f32 %v1871_v6, %v1809_v11 }
 0x1cf   :  { %v1820_v15 = vmul.f32 %v1683_v50, %v3888_v53  ;;  %v1821_v21 = vmul.f32 %v1684_v47, %v3897_v33 }
 0x1d0   :  { %v1738_v52 = vadd.f32 %v1737_v19, %v1674_v5  ;;  %v1873_v62 = vadd.f32 %v1872_v0, %v1810_v48  ;;  %v1608_v43 = vpop.permute.xlu0 %1607  ;;  %v1613_v16 = vpop.permute.xlu1 %1612 }
 0x1d1   :  { %v1685_v49 = vmul.f32 %v1608_v43, %v3904_v8  ;;  %v1686_v11 = vmul.f32 %v1613_v16, %v3910_v3 }
 0x1d2   :  { %v1739_v42 = vadd.f32 %v1738_v52, %v1675_v20  ;;  %v1874_v44 = vadd.f32 %v1873_v62, %v1811_v23 }
 0x1d3   :  { %v1822_v31 = vmul.f32 %v1685_v49, %v3904_v8  ;;  %v1823_v53 = vmul.f32 %v1686_v11, %v3910_v3 }
 0x1d4   :  { %v1740_v38 = vadd.f32 %v1739_v42, %v1676_v60  ;;  %v1875_v24 = vadd.f32 %v1874_v44, %v1812_v59  ;;  %v1618_v35 = vpop.permute.xlu0 %1617  ;;  %v1623_v19 = vpop.permute.xlu1 %1622 }
 0x1d5   :  { %v1687_v17 = vmul.f32 %v1618_v35, %v3919_v22  ;;  %v1688_v0 = vmul.f32 %v1623_v19, %v3926_v29 }
 0x1d6   :  { %v1741_v40 = vadd.f32 %v1740_v38, %v1677_v34  ;;  %v1876_v2 = vadd.f32 %v1875_v24, %v1813_v10 }
 0x1d7   :  { %v1824_v33 = vmul.f32 %v1687_v17, %v3919_v22  ;;  %v1825_v59 = vmul.f32 %v1688_v0, %v3926_v29  ;;  %v1761_v22 = vld [vmem:[#allocation8 + $0x1] sm:$0x1] }
 0x1d8   :  { %v1742_v28 = vadd.f32 %v1741_v40, %v1678_v54  ;;  %v1877_v26 = vadd.f32 %v1876_v2, %v1814_v46  ;;  %v1689_v46 = vld [vmem:[#allocation8] sm:$0x1] }
 0x1da   :  { %v1743_v18 = vadd.f32 %v1742_v28, %v1679_v25  ;;  %v1878_v58 = vadd.f32 %v1877_v26, %v1815_v56 }
 0x1dc   :  { %v1744_v12 = vadd.f32 %v1743_v18, %v1680_v9  ;;  %v1879_v61 = vadd.f32 %v1878_v58, %v1816_v41 }
 0x1de   :  { %v1745_v14 = vadd.f32 %v1744_v12, %v1681_v55  ;;  %v1880_v37 = vadd.f32 %v1879_v61, %v1817_v57 }
 0x1e0   :  { %v1746_v27 = vadd.f32 %v1745_v14, %v1682_v13  ;;  %v1881_v32 = vadd.f32 %v1880_v37, %v1818_v30 }
 0x1e2   :  { %v1747_v45 = vadd.f32 %v1746_v27, %v1683_v50  ;;  %v1882_v63 = vadd.f32 %v1881_v32, %v1819_v36 }
 0x1e4   :  { %v1748_v5 = vadd.f32 %v1747_v45, %v1684_v47  ;;  %v1883_v6 = vadd.f32 %v1882_v63, %v1820_v15 }
 0x1e6   :  { %v1749_v48 = vadd.f32 %v1748_v5, %v1685_v49  ;;  %v1884_v20 = vadd.f32 %v1883_v6, %v1821_v21 }
 0x1e8   :  { %v1750_v51 = vadd.f32 %v1749_v48, %v1686_v11  ;;  %v1885_v23 = vadd.f32 %v1884_v20, %v1822_v31 }
 0x1ea   :  { %v1751_v60 = vadd.f32 %v1750_v51, %v1687_v17  ;;  %v1886_v52 = vadd.f32 %v1885_v23, %v1823_v53 }
 0x1ec   :  { %v1752_v62 = vadd.f32 %v1751_v60, %v1688_v0  ;;  %v1887_v34 = vadd.f32 %v1886_v52, %v1824_v33 }
 0x1ee   :  { %v1753_v8 = vrot.slane %v1752_v62, 4  ;;  %v1888_v42 = vadd.f32 %v1887_v34, %v1825_v59 }
 0x1f0   :  { %v1754_v44 = vadd.f32 %v1753_v8, %v1752_v62  ;;  %v1889_v39 = vrot.slane %v1888_v42, 4 }
 0x1f2   :  { %v1755_v10 = vrot.slane %v1754_v44, 2  ;;  %v1890_v54 = vadd.f32 %v1889_v39, %v1888_v42 }
 0x1f4   :  { %v1756_v38 = vadd.f32 %v1755_v10, %v1754_v44  ;;  %v1891_v3 = vrot.slane %v1890_v54, 2 }
 0x1f6   :  { %v1892_v24 = vadd.f32 %v1891_v3, %v1890_v54  ;;  %v1757_v1 = vrot.slane %v1756_v38, 1 }
 0x1f8   :  { %v1758_v25 = vadd.f32 %v1757_v1, %v1756_v38  ;;  %v1893_v40 = vrot.slane %v1892_v24, 1 }
 0x1fa   :  { %v1759_v2 = vadd.f32 %v1758_v25, %v1689_v46  ;;  %v1894_v56 = vadd.f32 %v1893_v40, %v1892_v24 }
 0x1fc   :  { %1760 = vst [vmem:[#allocation8] sm:$0x1] %v1759_v2  ;;  %v1895_v29 = vadd.f32 %v1894_v56, %v1761_v22 }
 0x1fe   :  { %1896 = vst [vmem:[#allocation8 + $0x1] sm:$0x1] %v1895_v29 }
 0x1ff   :  { %2871 = shalt.err (!%p2868_p0)
}
 0x200   :  { %2242 = dma.vmem_to_hbm [thread:$0]  %s2240_s18, 128, %s4020_s4, [#allocation9]  }
 0x201   :  { %2884 = dma.done.wait [#allocation6], 4096  }
 0x202   :  { %2885 = vsyncadd [#allocation6], 4294963200 }
 0x203   :  { %2886 = dma.done.wait [#allocation9], 128  }
 0x204   :  { %2887 = vsyncadd [#allocation9], 4294967168 }
 0x205   :  { %2249 = vsyncpa [#allocation5], 1 }
 0x206   :  { %2250 = vsyncpa [#allocation6], 1 }
 0x207   :  { %2251 = vsyncpa [#allocation9], 1 }
 0x208   :  { %2252 = vsyncmov [#allocation3] }
 0x20b   :  { %s2253_s28 = vpop.sfrf %2252 }
 0x20c   :  { %p2506_p1 = scmp.ne.s32.totalorder %s2253_s28, 0 }
 0x20e   :  { %2257 = shalt.err (%p2506_p1)  }
 0x20f   :  { %2259 = vsyncmov [#allocation3 + $0x1] }
 0x212   :  { %s2260_s29 = vpop.sfrf %2259 }
 0x213   :  { %p2507_p2 = scmp.ne.s32.totalorder %s2260_s29, 0 }
 0x215   :  { %2264 = shalt.err (%p2507_p2)  }

</bundles_post_ra>
